<compile_context>
chip_gen: v7x
topology: tpu7x:2x2x1
jax: 0.10.0
libtpu: 0.0.40
codegen_flags: <defaults>
</compile_context>

<pallas_src>
import math
import jax
import jax.numpy as jnp
from jax.experimental import pallas as pl
from jax.experimental.pallas import tpu as pltpu

# ---------------- config (small, deterministic) ----------------
VOCAB   = 100
B, S, H = 2, 8, 32
NH, HD  = 4, 8          # num heads, head dim (NH * HD == H)
FF      = 64            # intermediate size
NLAYERS = 2
MAXPOS  = 16
EPS     = 1e-12
DROPOUT_RATE = 0.1      # nn.Dropout(dropout_rate); identity in eval mode
NEG_BIG = 1e9           # additive mask magnitude (f32 throughout)
BS = B * S

# rows of the packed per-layer vector slab (NLAYERS, 9, H)
LN1G, LN1B, LN2G, LN2B, BO, BF, BQ, BK, BV = range(9)
NVEC = 9


# ---------------- shared math helpers ----------------
def _layernorm(x, g, b):
    mu  = jnp.mean(x, axis=-1, keepdims=True)
    var = jnp.mean((x - mu) ** 2, axis=-1, keepdims=True)
    return (x - mu) * jax.lax.rsqrt(var + EPS) * g + b


def _gelu(x):
    # TODO(synk): HF Electra default is exact (erf) GELU; tanh approximation
    # used for robust Mosaic lowering (the in-file reference matches it).
    c = math.sqrt(2.0 / math.pi)
    return 0.5 * x * (1.0 + jnp.tanh(c * (x + 0.044715 * x * x * x)))


# ---------------- fused encoder kernel ----------------
def encoder_kernel(emb_ref, bias_ref, eln_ref,
                   wqkv_ref, wo_ref, wib_ref, wf_ref, vec_ref,
                   o_ref, h_ref, ctx_ref):
    """One grid step = one encoder layer, whole batch processed as (B*S, H) rows.

    The hidden state lives in the VMEM scratch h_ref across all NLAYERS steps;
    HBM is touched only for the embeddings, per-layer weight slabs and the
    final writeback.  NOTE: the layer grid axis must stay sequential
    ("arbitrary") -- the carried state in h_ref depends on it.
    """
    l = pl.program_id(0)

    # layer 0: embedding LayerNorm seeds the resident hidden state
    @pl.when(l == 0)
    def _():
        h_ref[...] = _layernorm(emb_ref[...], eln_ref[0:1, :], eln_ref[1:2, :])

    x2  = h_ref[...]                        # (B*S, H)
    vec = vec_ref[...]                      # (9, H)

    # --- Q/K/V projections: three (B*S,H)@(H,H) matmuls on separate weight
    #     blocks (avoids non-lane-aligned slicing of a fused (H,3H) result) ---
    q = jnp.dot(x2, wqkv_ref[0], preferred_element_type=jnp.float32) + vec[BQ:BQ + 1, :]
    k = jnp.dot(x2, wqkv_ref[1], preferred_element_type=jnp.float32) + vec[BK:BK + 1, :]
    v = jnp.dot(x2, wqkv_ref[2], preferred_element_type=jnp.float32) + vec[BV:BV + 1, :]
    q = q * (1.0 / math.sqrt(HD))           # fold the score scale into q once

    # --- attention scores for every (batch, head) pair, stacked along
    #     sublanes into one (B*NH*S, S) slab so softmax runs ONCE per layer ---
    # TODO(synk): per-head HD=8 lane slices are sub-(8,128); at production dims
    #             (HD>=64, H multiple of 128) replace the unrolled loop with a
    #             head-batched dot_general on lane-aligned blocks.
    s_blocks = []
    for b in range(B):
        for hh in range(NH):
            lo = hh * HD
            s_blocks.append(jnp.einsum(
                'qd,kd->qk',
                q[b * S:(b + 1) * S, lo:lo + HD],
                k[b * S:(b + 1) * S, lo:lo + HD],
                preferred_element_type=jnp.float32))
    s = jnp.concatenate(s_blocks, axis=0) + bias_ref[...]      # (B*NH*S, S)

    m = jnp.max(s, axis=-1, keepdims=True)
    e = jnp.exp(s - m)
    p = e / jnp.sum(e, axis=-1, keepdims=True)   # exact reciprocal (depth-safe)

    # --- per-head context written into its lane slice of one (B*S, H) buffer,
    #     then a SINGLE (B*S,H)@(H,H) output projection ---
    for b in range(B):
        for hh in range(NH):
            idx = b * NH + hh
            lo  = hh * HD
            ctx_ref[b * S:(b + 1) * S, lo:lo + HD] = jnp.dot(
                p[idx * S:(idx + 1) * S, :],
                v[b * S:(b + 1) * S, lo:lo + HD],
                preferred_element_type=jnp.float32)
    attn = jnp.dot(ctx_ref[...], wo_ref[...],
                   preferred_element_type=jnp.float32) + vec[BO:BO + 1, :]

    # --- residual + LayerNorm 1 ---
    res1 = _layernorm(x2 + attn, vec[LN1G:LN1G + 1, :], vec[LN1B:LN1B + 1, :])

    # --- feed-forward (wi rows 0..H-1 and bi row H packed in one slab) ---
    hmid = _gelu(jnp.dot(res1, wib_ref[0:H, :],
                         preferred_element_type=jnp.float32) + wib_ref[H:H + 1, :])
    ffn = jnp.dot(hmid, wf_ref[...],
                  preferred_element_type=jnp.float32) + vec[BF:BF + 1, :]

    # --- residual + LayerNorm 2 ---
    new_h = _layernorm(res1 + ffn, vec[LN2G:LN2G + 1, :], vec[LN2B:LN2B + 1, :])
    h_ref[...] = new_h

    @pl.when(l == pl.num_programs(0) - 1)
    def _():
        o_ref[...] = new_h


def _build_encoder_call():
    def const(shape):
        return pl.BlockSpec(shape, lambda l, _s=shape: (0,) * len(_s))

    def per_l(shape):
        return pl.BlockSpec((None,) + shape, lambda l, _s=shape: (l,) + (0,) * len(_s))

    return pl.pallas_call(
        encoder_kernel,
        out_shape=jax.ShapeDtypeStruct((BS, H), jnp.float32),
        grid_spec=pltpu.PrefetchScalarGridSpec(
            num_scalar_prefetch=0,
            grid=(NLAYERS,),
            in_specs=[
                const((BS, H)),             # embeddings, whole batch as rows
                const((B * NH * S, S)),     # additive attention bias (pre-broadcast)
                const((2, H)),              # [emb LN gamma; emb LN beta]
                per_l((3, H, H)),           # [wq; wk; wv]
                per_l((H, H)),              # wo
                per_l((H + 1, FF)),         # [wi; bi]
                per_l((FF, H)),             # wf
                per_l((NVEC, H)),           # [ln1g,ln1b,ln2g,ln2b,bo,bf,bq,bk,bv]
            ],
            out_specs=pl.BlockSpec((BS, H), lambda l: (0, 0)),
            scratch_shapes=[pltpu.VMEM((BS, H), jnp.float32),    # resident hidden
                            pltpu.VMEM((BS, H), jnp.float32)],   # ctx assembly
        ),
        # layer axis is a sequential carry -> "arbitrary"
        compiler_params=pltpu.CompilerParams(
            dimension_semantics=("arbitrary",)),
    )


_ENCODER_CALL = _build_encoder_call()


# ---------------- parameters (deterministic init) ----------------
def make_params(key):
    ks = iter(jax.random.split(key, 24))

    def w(shape, scale=0.02):
        return jax.random.normal(next(ks), shape, jnp.float32) * scale

    ln1g = 1.0 + w((NLAYERS, 1, H)); ln1b = w((NLAYERS, 1, H))
    ln2g = 1.0 + w((NLAYERS, 1, H)); ln2b = w((NLAYERS, 1, H))
    bo = w((NLAYERS, 1, H)); bf = w((NLAYERS, 1, H))
    bq = w((NLAYERS, 1, H)); bk = w((NLAYERS, 1, H)); bv = w((NLAYERS, 1, H))
    vec = jnp.concatenate([ln1g, ln1b, ln2g, ln2b, bo, bf, bq, bk, bv], axis=1)  # (L,9,H)

    wi = w((NLAYERS, H, FF)); bi = w((NLAYERS, 1, FF))
    wib = jnp.concatenate([wi, bi], axis=1)                                       # (L,H+1,FF)

    eg = 1.0 + w((1, H)); eb = w((1, H))
    eln = jnp.concatenate([eg, eb], axis=0)                                       # (2,H)

    return {
        "word_emb": w((VOCAB, H)),
        "pos_emb":  w((MAXPOS, H)),
        "type_emb": w((2, H)),
        "eln":  eln,
        "wqkv": w((NLAYERS, 3, H, H)),
        "wo":   w((NLAYERS, H, H)),
        "wib":  wib,
        "wf":   w((NLAYERS, FF, H)),
        "vec":  vec,
    }


# ---------------- forward pass ----------------
@jax.jit
def electra_encoder_forward(params, input_ids):
    # attention_mask = (input != 0).float()  -- matches the PyTorch module
    mask = (input_ids != 0).astype(jnp.float32)                 # (B, S)
    attn_bias = (mask - 1.0) * NEG_BIG                          # (B, S) additive
    # pre-broadcast so the kernel adds it once to the (B*NH*S, S) score slab
    bias_exp = jnp.repeat(attn_bias, NH * S, axis=0)            # (B*NH*S, S)

    # embeddings (gather is plain-JAX glue)
    pos_ids = jnp.arange(S, dtype=jnp.int32)
    emb = (params["word_emb"][input_ids]
           + params["pos_emb"][pos_ids][None, :, :]
           + params["type_emb"][0][None, None, :])              # (B, S, H)

    hidden = _ENCODER_CALL(
        emb.reshape(BS, H), bias_exp, params["eln"],
        params["wqkv"], params["wo"], params["wib"], params["wf"], params["vec"])

    # nn.Dropout: identity in inference/eval mode.
    # TODO(synk): training-mode dropout (random zeroing + 1/(1-p) scaling) not applied.
    return hidden.reshape(B, S, H)


# ---------------- pure-JAX reference (same math, no Pallas) ----------------
def electra_encoder_reference(params, input_ids):
    mask = (input_ids != 0).astype(jnp.float32)
    bias = ((mask - 1.0) * NEG_BIG)[:, None, None, :]           # (B,1,1,S)
    pos_ids = jnp.arange(S, dtype=jnp.int32)
    h = (params["word_emb"][input_ids]
         + params["pos_emb"][pos_ids][None, :, :]
         + params["type_emb"][0][None, None, :])
    h = _layernorm(h, params["eln"][0], params["eln"][1])
    scale = 1.0 / math.sqrt(HD)
    for l in range(NLAYERS):
        vec = params["vec"][l]
        wq, wk, wv = params["wqkv"][l]
        q = (h @ wq + vec[BQ]).reshape(B, S, NH, HD)
        k = (h @ wk + vec[BK]).reshape(B, S, NH, HD)
        v = (h @ wv + vec[BV]).reshape(B, S, NH, HD)
        s = jnp.einsum('bqhd,bkhd->bhqk', q, k) * scale + bias
        p = jax.nn.softmax(s, axis=-1)
        ctx = jnp.einsum('bhqk,bkhd->bqhd', p, v).reshape(B, S, H)
        attn = ctx @ params["wo"][l] + vec[BO]
        r1 = _layernorm(h + attn, vec[LN1G], vec[LN1B])
        ffn = (_gelu(r1 @ params["wib"][l, :H, :] + params["wib"][l, H, :])
               @ params["wf"][l] + vec[BF])
        h = _layernorm(r1 + ffn, vec[LN2G], vec[LN2B])
    return h


if __name__ == "__main__":
    key = jax.random.PRNGKey(0)
    k_param, k_ids = jax.random.split(key)

    params = make_params(k_param)
    input_ids = jax.random.randint(k_ids, (B, S), 1, VOCAB, dtype=jnp.int32)
    # introduce some padding (token id 0) so the attention mask matters
    input_ids = input_ids.at[0, 6:].set(0)
    input_ids = input_ids.at[1, 5:].set(0)

    out = electra_encoder_forward(params, input_ids)
    out = jax.block_until_ready(out)

    ref = electra_encoder_reference(params, input_ids)
    assert out.shape == (B, S, H) and out.dtype == jnp.float32
    assert jnp.allclose(out, ref, atol=3e-3, rtol=3e-3), "mismatch vs JAX reference"

    print("KERNEL_OK")
</pallas_src>

<mosaic_0001>
module attributes {stable_mosaic.version = 11 : i64} {
  func.func @encoder_kernel(%arg0: i32, %arg1: memref<16x32xf32, #tpu.memory_space<vmem>>, %arg2: memref<64x8xf32, #tpu.memory_space<vmem>>, %arg3: memref<2x32xf32, #tpu.memory_space<vmem>>, %arg4: memref<1x3x32x32xf32, #tpu.memory_space<vmem>>, %arg5: memref<1x32x32xf32, #tpu.memory_space<vmem>>, %arg6: memref<1x33x64xf32, #tpu.memory_space<vmem>>, %arg7: memref<1x64x32xf32, #tpu.memory_space<vmem>>, %arg8: memref<1x9x32xf32, #tpu.memory_space<vmem>>, %arg9: memref<16x32xf32, #tpu.memory_space<vmem>>, %arg10: memref<16x32xf32, #tpu.memory_space<vmem>>, %arg11: memref<16x32xf32, #tpu.memory_space<vmem>>) attributes {dimension_semantics = [#tpu.dimension_semantics<arbitrary>], iteration_bounds = array<i64: 2>, scalar_prefetch = 0 : i64, scratch_operands = 2 : i64, tpu.core_type = #tpu.core_type<tc>, window_params = [{pipeline_mode = #tpu.pipeline_mode<synchronous>, transform_indices = @transform_0, window_bounds = array<i64: 16, 32>}, {pipeline_mode = #tpu.pipeline_mode<synchronous>, transform_indices = @transform_1, window_bounds = array<i64: 64, 8>}, {pipeline_mode = #tpu.pipeline_mode<synchronous>, transform_indices = @transform_2, window_bounds = array<i64: 2, 32>}, {transform_indices = @transform_3, window_bounds = array<i64: 1, 3, 32, 32>}, {transform_indices = @transform_4, window_bounds = array<i64: 1, 32, 32>}, {transform_indices = @transform_5, window_bounds = array<i64: 1, 33, 64>}, {transform_indices = @transform_6, window_bounds = array<i64: 1, 64, 32>}, {transform_indices = @transform_7, window_bounds = array<i64: 1, 9, 32>}, {pipeline_mode = #tpu.pipeline_mode<synchronous>, transform_indices = @transform_8, window_bounds = array<i64: 16, 32>}]} {
    %c0_i32 = arith.constant 0 : i32
    %0 = arith.cmpi eq, %arg0, %c0_i32 : i32
    %1 = arith.extui %0 : i1 to i32
    %c0_i32_0 = arith.constant 0 : i32
    %2 = arith.cmpi ne, %1, %c0_i32_0 : i32
    scf.if %2 {
      %c0_84 = arith.constant 0 : index
      %c0_85 = arith.constant 0 : index
      %181 = vector.load %arg1[%c0_84, %c0_85] : memref<16x32xf32, #tpu.memory_space<vmem>>, vector<16x32xf32>
      %c0_86 = arith.constant 0 : index
      %c0_87 = arith.constant 0 : index
      %182 = vector.load %arg3[%c0_86, %c0_87] : memref<2x32xf32, #tpu.memory_space<vmem>>, vector<1x32xf32>
      %c1_88 = arith.constant 1 : index
      %c0_89 = arith.constant 0 : index
      %183 = vector.load %arg3[%c1_88, %c0_89] : memref<2x32xf32, #tpu.memory_space<vmem>>, vector<1x32xf32>
      %cst_90 = arith.constant dense<0.000000e+00> : vector<16xf32>
      %184 = vector.multi_reduction <add>, %181, %cst_90 [1] : vector<16x32xf32> to vector<16xf32>
      %185 = vector.shape_cast %184 : vector<16xf32> to vector<16x1xf32>
      %cst_91 = arith.constant 3.200000e+01 : f32
      %186 = vector.broadcast %cst_91 : f32 to vector<16x1xf32>
      %187 = arith.divf %185, %186 : vector<16x1xf32>
      %188 = vector.broadcast %187 : vector<16x1xf32> to vector<16x32xf32>
      %189 = arith.subf %181, %188 : vector<16x32xf32>
      %190 = arith.mulf %189, %189 : vector<16x32xf32>
      %cst_92 = arith.constant dense<0.000000e+00> : vector<16xf32>
      %191 = vector.multi_reduction <add>, %190, %cst_92 [1] : vector<16x32xf32> to vector<16xf32>
      %192 = vector.shape_cast %191 : vector<16xf32> to vector<16x1xf32>
      %cst_93 = arith.constant 3.200000e+01 : f32
      %193 = vector.broadcast %cst_93 : f32 to vector<16x1xf32>
      %194 = arith.divf %192, %193 : vector<16x1xf32>
      %195 = vector.broadcast %187 : vector<16x1xf32> to vector<16x32xf32>
      %196 = arith.subf %181, %195 : vector<16x32xf32>
      %cst_94 = arith.constant 9.99999996E-13 : f32
      %197 = vector.broadcast %cst_94 : f32 to vector<16x1xf32>
      %198 = arith.addf %194, %197 : vector<16x1xf32>
      %199 = math.rsqrt %198 : vector<16x1xf32>
      %200 = vector.broadcast %199 : vector<16x1xf32> to vector<16x32xf32>
      %201 = arith.mulf %196, %200 : vector<16x32xf32>
      %202 = vector.broadcast %182 : vector<1x32xf32> to vector<16x32xf32>
      %203 = arith.mulf %201, %202 : vector<16x32xf32>
      %204 = vector.broadcast %183 : vector<1x32xf32> to vector<16x32xf32>
      %205 = arith.addf %203, %204 : vector<16x32xf32>
      %c0_95 = arith.constant 0 : index
      %c0_96 = arith.constant 0 : index
      %206 = vector.load %arg10[%c0_95, %c0_96] : memref<16x32xf32, #tpu.memory_space<vmem>>, vector<16x32xf32>
      tpu.vector_store %arg10[%c0_95, %c0_96], %205 {strides = array<i32>} : memref<16x32xf32, #tpu.memory_space<vmem>>, vector<16x32xf32>,
    } else {
    }
    %c0 = arith.constant 0 : index
    %c0_1 = arith.constant 0 : index
    %3 = vector.load %arg10[%c0, %c0_1] : memref<16x32xf32, #tpu.memory_space<vmem>>, vector<16x32xf32>
    %c0_2 = arith.constant 0 : index
    %c0_3 = arith.constant 0 : index
    %c0_4 = arith.constant 0 : index
    %4 = vector.load %arg8[%c0_2, %c0_3, %c0_4] : memref<1x9x32xf32, #tpu.memory_space<vmem>>, vector<1x9x32xf32>
    %5 = vector.shape_cast %4 : vector<1x9x32xf32> to vector<9x32xf32>
    %c0_5 = arith.constant 0 : index
    %c0_6 = arith.constant 0 : index
    %c0_7 = arith.constant 0 : index
    %c0_8 = arith.constant 0 : index
    %6 = vector.load %arg4[%c0_5, %c0_6, %c0_7, %c0_8] : memref<1x3x32x32xf32, #tpu.memory_space<vmem>>, vector<1x1x32x32xf32>
    %7 = vector.shape_cast %6 : vector<1x1x32x32xf32> to vector<32x32xf32>
    %cst = arith.constant dense<0.000000e+00> : vector<16x32xf32>
    %8 = tpu.matmul %3, %7, %cst {dimension_numbers = #tpu.dot_dimension_numbers<[1], [0], [0], [1], [0, 0, 1, 1], [], []>} : vector<16x32xf32>, vector<32x32xf32>, vector<16x32xf32> -> vector<16x32xf32>
    %9 = vector.extract_strided_slice %5 {offsets = [6, 0], sizes = [1, 32], strides = [1, 1]} : vector<9x32xf32> to vector<1x32xf32>
    %10 = vector.broadcast %9 : vector<1x32xf32> to vector<16x32xf32>
    %11 = arith.addf %8, %10 : vector<16x32xf32>
    %c0_9 = arith.constant 0 : index
    %c1 = arith.constant 1 : index
    %c0_10 = arith.constant 0 : index
    %c0_11 = arith.constant 0 : index
    %12 = vector.load %arg4[%c0_9, %c1, %c0_10, %c0_11] : memref<1x3x32x32xf32, #tpu.memory_space<vmem>>, vector<1x1x32x32xf32>
    %13 = vector.shape_cast %12 : vector<1x1x32x32xf32> to vector<32x32xf32>
    %cst_12 = arith.constant dense<0.000000e+00> : vector<16x32xf32>
    %14 = tpu.matmul %3, %13, %cst_12 {dimension_numbers = #tpu.dot_dimension_numbers<[1], [0], [0], [1], [0, 0, 1, 1], [], []>} : vector<16x32xf32>, vector<32x32xf32>, vector<16x32xf32> -> vector<16x32xf32>
    %15 = vector.extract_strided_slice %5 {offsets = [7, 0], sizes = [1, 32], strides = [1, 1]} : vector<9x32xf32> to vector<1x32xf32>
    %16 = vector.broadcast %15 : vector<1x32xf32> to vector<16x32xf32>
    %17 = arith.addf %14, %16 : vector<16x32xf32>
    %c0_13 = arith.constant 0 : index
    %c2 = arith.constant 2 : index
    %c0_14 = arith.constant 0 : index
    %c0_15 = arith.constant 0 : index
    %18 = vector.load %arg4[%c0_13, %c2, %c0_14, %c0_15] : memref<1x3x32x32xf32, #tpu.memory_space<vmem>>, vector<1x1x32x32xf32>
    %19 = vector.shape_cast %18 : vector<1x1x32x32xf32> to vector<32x32xf32>
    %cst_16 = arith.constant dense<0.000000e+00> : vector<16x32xf32>
    %20 = tpu.matmul %3, %19, %cst_16 {dimension_numbers = #tpu.dot_dimension_numbers<[1], [0], [0], [1], [0, 0, 1, 1], [], []>} : vector<16x32xf32>, vector<32x32xf32>, vector<16x32xf32> -> vector<16x32xf32>
    %21 = vector.extract_strided_slice %5 {offsets = [8, 0], sizes = [1, 32], strides = [1, 1]} : vector<9x32xf32> to vector<1x32xf32>
    %22 = vector.broadcast %21 : vector<1x32xf32> to vector<16x32xf32>
    %23 = arith.addf %20, %22 : vector<16x32xf32>
    %cst_17 = arith.constant 0.353553385 : f32
    %24 = vector.broadcast %cst_17 : f32 to vector<16x32xf32>
    %25 = arith.mulf %11, %24 : vector<16x32xf32>
    %26 = vector.extract_strided_slice %25 {offsets = [0, 0], sizes = [8, 8], strides = [1, 1]} : vector<16x32xf32> to vector<8x8xf32>
    %27 = vector.extract_strided_slice %17 {offsets = [0, 0], sizes = [8, 8], strides = [1, 1]} : vector<16x32xf32> to vector<8x8xf32>
    "tpu.trace_start"() <{level = 10 : i32, message = "qd,kd->qk"}> : () -> ()
    %cst_18 = arith.constant dense<0.000000e+00> : vector<8x8xf32>
    %28 = tpu.matmul %26, %27, %cst_18 {dimension_numbers = #tpu.dot_dimension_numbers<[1], [1], [0], [0], [0, 0, 1, 0], [], []>} : vector<8x8xf32>, vector<8x8xf32>, vector<8x8xf32> -> vector<8x8xf32>
    "tpu.trace_stop"() : () -> ()
    %29 = vector.extract_strided_slice %25 {offsets = [0, 8], sizes = [8, 8], strides = [1, 1]} : vector<16x32xf32> to vector<8x8xf32>
    %30 = vector.extract_strided_slice %17 {offsets = [0, 8], sizes = [8, 8], strides = [1, 1]} : vector<16x32xf32> to vector<8x8xf32>
    "tpu.trace_start"() <{level = 10 : i32, message = "qd,kd->qk"}> : () -> ()
    %cst_19 = arith.constant dense<0.000000e+00> : vector<8x8xf32>
    %31 = tpu.matmul %29, %30, %cst_19 {dimension_numbers = #tpu.dot_dimension_numbers<[1], [1], [0], [0], [0, 0, 1, 0], [], []>} : vector<8x8xf32>, vector<8x8xf32>, vector<8x8xf32> -> vector<8x8xf32>
    "tpu.trace_stop"() : () -> ()
    %32 = vector.extract_strided_slice %25 {offsets = [0, 16], sizes = [8, 8], strides = [1, 1]} : vector<16x32xf32> to vector<8x8xf32>
    %33 = vector.extract_strided_slice %17 {offsets = [0, 16], sizes = [8, 8], strides = [1, 1]} : vector<16x32xf32> to vector<8x8xf32>
    "tpu.trace_start"() <{level = 10 : i32, message = "qd,kd->qk"}> : () -> ()
    %cst_20 = arith.constant dense<0.000000e+00> : vector<8x8xf32>
    %34 = tpu.matmul %32, %33, %cst_20 {dimension_numbers = #tpu.dot_dimension_numbers<[1], [1], [0], [0], [0, 0, 1, 0], [], []>} : vector<8x8xf32>, vector<8x8xf32>, vector<8x8xf32> -> vector<8x8xf32>
    "tpu.trace_stop"() : () -> ()
    %35 = vector.extract_strided_slice %25 {offsets = [0, 24], sizes = [8, 8], strides = [1, 1]} : vector<16x32xf32> to vector<8x8xf32>
    %36 = vector.extract_strided_slice %17 {offsets = [0, 24], sizes = [8, 8], strides = [1, 1]} : vector<16x32xf32> to vector<8x8xf32>
    "tpu.trace_start"() <{level = 10 : i32, message = "qd,kd->qk"}> : () -> ()
    %cst_21 = arith.constant dense<0.000000e+00> : vector<8x8xf32>
    %37 = tpu.matmul %35, %36, %cst_21 {dimension_numbers = #tpu.dot_dimension_numbers<[1], [1], [0], [0], [0, 0, 1, 0], [], []>} : vector<8x8xf32>, vector<8x8xf32>, vector<8x8xf32> -> vector<8x8xf32>
    "tpu.trace_stop"() : () -> ()
    %38 = vector.extract_strided_slice %25 {offsets = [8, 0], sizes = [8, 8], strides = [1, 1]} : vector<16x32xf32> to vector<8x8xf32>
    %39 = vector.extract_strided_slice %17 {offsets = [8, 0], sizes = [8, 8], strides = [1, 1]} : vector<16x32xf32> to vector<8x8xf32>
    "tpu.trace_start"() <{level = 10 : i32, message = "qd,kd->qk"}> : () -> ()
    %cst_22 = arith.constant dense<0.000000e+00> : vector<8x8xf32>
    %40 = tpu.matmul %38, %39, %cst_22 {dimension_numbers = #tpu.dot_dimension_numbers<[1], [1], [0], [0], [0, 0, 1, 0], [], []>} : vector<8x8xf32>, vector<8x8xf32>, vector<8x8xf32> -> vector<8x8xf32>
    "tpu.trace_stop"() : () -> ()
    %41 = vector.extract_strided_slice %25 {offsets = [8, 8], sizes = [8, 8], strides = [1, 1]} : vector<16x32xf32> to vector<8x8xf32>
    %42 = vector.extract_strided_slice %17 {offsets = [8, 8], sizes = [8, 8], strides = [1, 1]} : vector<16x32xf32> to vector<8x8xf32>
    "tpu.trace_start"() <{level = 10 : i32, message = "qd,kd->qk"}> : () -> ()
    %cst_23 = arith.constant dense<0.000000e+00> : vector<8x8xf32>
    %43 = tpu.matmul %41, %42, %cst_23 {dimension_numbers = #tpu.dot_dimension_numbers<[1], [1], [0], [0], [0, 0, 1, 0], [], []>} : vector<8x8xf32>, vector<8x8xf32>, vector<8x8xf32> -> vector<8x8xf32>
    "tpu.trace_stop"() : () -> ()
    %44 = vector.extract_strided_slice %25 {offsets = [8, 16], sizes = [8, 8], strides = [1, 1]} : vector<16x32xf32> to vector<8x8xf32>
    %45 = vector.extract_strided_slice %17 {offsets = [8, 16], sizes = [8, 8], strides = [1, 1]} : vector<16x32xf32> to vector<8x8xf32>
    "tpu.trace_start"() <{level = 10 : i32, message = "qd,kd->qk"}> : () -> ()
    %cst_24 = arith.constant dense<0.000000e+00> : vector<8x8xf32>
    %46 = tpu.matmul %44, %45, %cst_24 {dimension_numbers = #tpu.dot_dimension_numbers<[1], [1], [0], [0], [0, 0, 1, 0], [], []>} : vector<8x8xf32>, vector<8x8xf32>, vector<8x8xf32> -> vector<8x8xf32>
    "tpu.trace_stop"() : () -> ()
    %47 = vector.extract_strided_slice %25 {offsets = [8, 24], sizes = [8, 8], strides = [1, 1]} : vector<16x32xf32> to vector<8x8xf32>
    %48 = vector.extract_strided_slice %17 {offsets = [8, 24], sizes = [8, 8], strides = [1, 1]} : vector<16x32xf32> to vector<8x8xf32>
    "tpu.trace_start"() <{level = 10 : i32, message = "qd,kd->qk"}> : () -> ()
    %cst_25 = arith.constant dense<0.000000e+00> : vector<8x8xf32>
    %49 = tpu.matmul %47, %48, %cst_25 {dimension_numbers = #tpu.dot_dimension_numbers<[1], [1], [0], [0], [0, 0, 1, 0], [], []>} : vector<8x8xf32>, vector<8x8xf32>, vector<8x8xf32> -> vector<8x8xf32>
    "tpu.trace_stop"() : () -> ()
    %50 = tpu.concatenate %28, %31, %34, %37, %40, %43, %46, %49 in 0 : vector<8x8xf32>, vector<8x8xf32>, vector<8x8xf32>, vector<8x8xf32>, vector<8x8xf32>, vector<8x8xf32>, vector<8x8xf32>, vector<8x8xf32> -> vector<64x8xf32>
    %c0_26 = arith.constant 0 : index
    %c0_27 = arith.constant 0 : index
    %51 = vector.load %arg2[%c0_26, %c0_27] : memref<64x8xf32, #tpu.memory_space<vmem>>, vector<64x8xf32>
    %52 = arith.addf %50, %51 : vector<64x8xf32>
    %cst_28 = arith.constant dense<0xFF800000> : vector<64xf32>
    %53 = vector.multi_reduction <maximumf>, %52, %cst_28 [1] : vector<64x8xf32> to vector<64xf32>
    %54 = vector.shape_cast %53 : vector<64xf32> to vector<64x1xf32>
    %55 = vector.broadcast %54 : vector<64x1xf32> to vector<64x8xf32>
    %56 = arith.subf %52, %55 : vector<64x8xf32>
    %57 = math.exp %56 : vector<64x8xf32>
    %cst_29 = arith.constant dense<0.000000e+00> : vector<64xf32>
    %58 = vector.multi_reduction <add>, %57, %cst_29 [1] : vector<64x8xf32> to vector<64xf32>
    %59 = vector.shape_cast %58 : vector<64xf32> to vector<64x1xf32>
    %60 = vector.broadcast %59 : vector<64x1xf32> to vector<64x8xf32>
    %61 = arith.divf %57, %60 : vector<64x8xf32>
    %62 = vector.extract_strided_slice %61 {offsets = [0, 0], sizes = [8, 8], strides = [1, 1]} : vector<64x8xf32> to vector<8x8xf32>
    %63 = vector.extract_strided_slice %23 {offsets = [0, 0], sizes = [8, 8], strides = [1, 1]} : vector<16x32xf32> to vector<8x8xf32>
    %cst_30 = arith.constant dense<0.000000e+00> : vector<8x8xf32>
    %64 = tpu.matmul %62, %63, %cst_30 {dimension_numbers = #tpu.dot_dimension_numbers<[1], [0], [0], [1], [0, 0, 1, 1], [], []>} : vector<8x8xf32>, vector<8x8xf32>, vector<8x8xf32> -> vector<8x8xf32>
    %c0_31 = arith.constant 0 : index
    %c0_32 = arith.constant 0 : index
    %65 = vector.load %arg11[%c0_31, %c0_32] : memref<16x32xf32, #tpu.memory_space<vmem>>, vector<8x8xf32>
    tpu.vector_store %arg11[%c0_31, %c0_32], %64 {strides = array<i32>} : memref<16x32xf32, #tpu.memory_space<vmem>>, vector<8x8xf32>,
    %66 = vector.extract_strided_slice %61 {offsets = [8, 0], sizes = [8, 8], strides = [1, 1]} : vector<64x8xf32> to vector<8x8xf32>
    %67 = vector.extract_strided_slice %23 {offsets = [0, 8], sizes = [8, 8], strides = [1, 1]} : vector<16x32xf32> to vector<8x8xf32>
    %cst_33 = arith.constant dense<0.000000e+00> : vector<8x8xf32>
    %68 = tpu.matmul %66, %67, %cst_33 {dimension_numbers = #tpu.dot_dimension_numbers<[1], [0], [0], [1], [0, 0, 1, 1], [], []>} : vector<8x8xf32>, vector<8x8xf32>, vector<8x8xf32> -> vector<8x8xf32>
    %c0_34 = arith.constant 0 : index
    %c8 = arith.constant 8 : index
    %69 = vector.load %arg11[%c0_34, %c8] : memref<16x32xf32, #tpu.memory_space<vmem>>, vector<8x8xf32>
    tpu.vector_store %arg11[%c0_34, %c8], %68 {strides = array<i32>} : memref<16x32xf32, #tpu.memory_space<vmem>>, vector<8x8xf32>,
    %70 = vector.extract_strided_slice %61 {offsets = [16, 0], sizes = [8, 8], strides = [1, 1]} : vector<64x8xf32> to vector<8x8xf32>
    %71 = vector.extract_strided_slice %23 {offsets = [0, 16], sizes = [8, 8], strides = [1, 1]} : vector<16x32xf32> to vector<8x8xf32>
    %cst_35 = arith.constant dense<0.000000e+00> : vector<8x8xf32>
    %72 = tpu.matmul %70, %71, %cst_35 {dimension_numbers = #tpu.dot_dimension_numbers<[1], [0], [0], [1], [0, 0, 1, 1], [], []>} : vector<8x8xf32>, vector<8x8xf32>, vector<8x8xf32> -> vector<8x8xf32>
    %c0_36 = arith.constant 0 : index
    %c16 = arith.constant 16 : index
    %73 = vector.load %arg11[%c0_36, %c16] : memref<16x32xf32, #tpu.memory_space<vmem>>, vector<8x8xf32>
    tpu.vector_store %arg11[%c0_36, %c16], %72 {strides = array<i32>} : memref<16x32xf32, #tpu.memory_space<vmem>>, vector<8x8xf32>,
    %74 = vector.extract_strided_slice %61 {offsets = [24, 0], sizes = [8, 8], strides = [1, 1]} : vector<64x8xf32> to vector<8x8xf32>
    %75 = vector.extract_strided_slice %23 {offsets = [0, 24], sizes = [8, 8], strides = [1, 1]} : vector<16x32xf32> to vector<8x8xf32>
    %cst_37 = arith.constant dense<0.000000e+00> : vector<8x8xf32>
    %76 = tpu.matmul %74, %75, %cst_37 {dimension_numbers = #tpu.dot_dimension_numbers<[1], [0], [0], [1], [0, 0, 1, 1], [], []>} : vector<8x8xf32>, vector<8x8xf32>, vector<8x8xf32> -> vector<8x8xf32>
    %c0_38 = arith.constant 0 : index
    %c24 = arith.constant 24 : index
    %77 = vector.load %arg11[%c0_38, %c24] : memref<16x32xf32, #tpu.memory_space<vmem>>, vector<8x8xf32>
    tpu.vector_store %arg11[%c0_38, %c24], %76 {strides = array<i32>} : memref<16x32xf32, #tpu.memory_space<vmem>>, vector<8x8xf32>,
    %78 = vector.extract_strided_slice %61 {offsets = [32, 0], sizes = [8, 8], strides = [1, 1]} : vector<64x8xf32> to vector<8x8xf32>
    %79 = vector.extract_strided_slice %23 {offsets = [8, 0], sizes = [8, 8], strides = [1, 1]} : vector<16x32xf32> to vector<8x8xf32>
    %cst_39 = arith.constant dense<0.000000e+00> : vector<8x8xf32>
    %80 = tpu.matmul %78, %79, %cst_39 {dimension_numbers = #tpu.dot_dimension_numbers<[1], [0], [0], [1], [0, 0, 1, 1], [], []>} : vector<8x8xf32>, vector<8x8xf32>, vector<8x8xf32> -> vector<8x8xf32>
    %c8_40 = arith.constant 8 : index
    %c0_41 = arith.constant 0 : index
    %81 = vector.load %arg11[%c8_40, %c0_41] : memref<16x32xf32, #tpu.memory_space<vmem>>, vector<8x8xf32>
    tpu.vector_store %arg11[%c8_40, %c0_41], %80 {strides = array<i32>} : memref<16x32xf32, #tpu.memory_space<vmem>>, vector<8x8xf32>,
    %82 = vector.extract_strided_slice %61 {offsets = [40, 0], sizes = [8, 8], strides = [1, 1]} : vector<64x8xf32> to vector<8x8xf32>
    %83 = vector.extract_strided_slice %23 {offsets = [8, 8], sizes = [8, 8], strides = [1, 1]} : vector<16x32xf32> to vector<8x8xf32>
    %cst_42 = arith.constant dense<0.000000e+00> : vector<8x8xf32>
    %84 = tpu.matmul %82, %83, %cst_42 {dimension_numbers = #tpu.dot_dimension_numbers<[1], [0], [0], [1], [0, 0, 1, 1], [], []>} : vector<8x8xf32>, vector<8x8xf32>, vector<8x8xf32> -> vector<8x8xf32>
    %c8_43 = arith.constant 8 : index
    %c8_44 = arith.constant 8 : index
    %85 = vector.load %arg11[%c8_43, %c8_44] : memref<16x32xf32, #tpu.memory_space<vmem>>, vector<8x8xf32>
    tpu.vector_store %arg11[%c8_43, %c8_44], %84 {strides = array<i32>} : memref<16x32xf32, #tpu.memory_space<vmem>>, vector<8x8xf32>,
    %86 = vector.extract_strided_slice %61 {offsets = [48, 0], sizes = [8, 8], strides = [1, 1]} : vector<64x8xf32> to vector<8x8xf32>
    %87 = vector.extract_strided_slice %23 {offsets = [8, 16], sizes = [8, 8], strides = [1, 1]} : vector<16x32xf32> to vector<8x8xf32>
    %cst_45 = arith.constant dense<0.000000e+00> : vector<8x8xf32>
    %88 = tpu.matmul %86, %87, %cst_45 {dimension_numbers = #tpu.dot_dimension_numbers<[1], [0], [0], [1], [0, 0, 1, 1], [], []>} : vector<8x8xf32>, vector<8x8xf32>, vector<8x8xf32> -> vector<8x8xf32>
    %c8_46 = arith.constant 8 : index
    %c16_47 = arith.constant 16 : index
    %89 = vector.load %arg11[%c8_46, %c16_47] : memref<16x32xf32, #tpu.memory_space<vmem>>, vector<8x8xf32>
    tpu.vector_store %arg11[%c8_46, %c16_47], %88 {strides = array<i32>} : memref<16x32xf32, #tpu.memory_space<vmem>>, vector<8x8xf32>,
    %90 = vector.extract_strided_slice %61 {offsets = [56, 0], sizes = [8, 8], strides = [1, 1]} : vector<64x8xf32> to vector<8x8xf32>
    %91 = vector.extract_strided_slice %23 {offsets = [8, 24], sizes = [8, 8], strides = [1, 1]} : vector<16x32xf32> to vector<8x8xf32>
    %cst_48 = arith.constant dense<0.000000e+00> : vector<8x8xf32>
    %92 = tpu.matmul %90, %91, %cst_48 {dimension_numbers = #tpu.dot_dimension_numbers<[1], [0], [0], [1], [0, 0, 1, 1], [], []>} : vector<8x8xf32>, vector<8x8xf32>, vector<8x8xf32> -> vector<8x8xf32>
    %c8_49 = arith.constant 8 : index
    %c24_50 = arith.constant 24 : index
    %93 = vector.load %arg11[%c8_49, %c24_50] : memref<16x32xf32, #tpu.memory_space<vmem>>, vector<8x8xf32>
    tpu.vector_store %arg11[%c8_49, %c24_50], %92 {strides = array<i32>} : memref<16x32xf32, #tpu.memory_space<vmem>>, vector<8x8xf32>,
    %c0_51 = arith.constant 0 : index
    %c0_52 = arith.constant 0 : index
    %94 = vector.load %arg11[%c0_51, %c0_52] : memref<16x32xf32, #tpu.memory_space<vmem>>, vector<16x32xf32>
    %c0_53 = arith.constant 0 : index
    %c0_54 = arith.constant 0 : index
    %c0_55 = arith.constant 0 : index
    %95 = vector.load %arg5[%c0_53, %c0_54, %c0_55] : memref<1x32x32xf32, #tpu.memory_space<vmem>>, vector<1x32x32xf32>
    %96 = vector.shape_cast %95 : vector<1x32x32xf32> to vector<32x32xf32>
    %cst_56 = arith.constant dense<0.000000e+00> : vector<16x32xf32>
    %97 = tpu.matmul %94, %96, %cst_56 {dimension_numbers = #tpu.dot_dimension_numbers<[1], [0], [0], [1], [0, 0, 1, 1], [], []>} : vector<16x32xf32>, vector<32x32xf32>, vector<16x32xf32> -> vector<16x32xf32>
    %98 = vector.extract_strided_slice %5 {offsets = [4, 0], sizes = [1, 32], strides = [1, 1]} : vector<9x32xf32> to vector<1x32xf32>
    %99 = vector.broadcast %98 : vector<1x32xf32> to vector<16x32xf32>
    %100 = arith.addf %97, %99 : vector<16x32xf32>
    %101 = arith.addf %3, %100 : vector<16x32xf32>
    %102 = vector.extract_strided_slice %5 {offsets = [0, 0], sizes = [1, 32], strides = [1, 1]} : vector<9x32xf32> to vector<1x32xf32>
    %103 = vector.extract_strided_slice %5 {offsets = [1, 0], sizes = [1, 32], strides = [1, 1]} : vector<9x32xf32> to vector<1x32xf32>
    %cst_57 = arith.constant dense<0.000000e+00> : vector<16xf32>
    %104 = vector.multi_reduction <add>, %101, %cst_57 [1] : vector<16x32xf32> to vector<16xf32>
    %105 = vector.shape_cast %104 : vector<16xf32> to vector<16x1xf32>
    %cst_58 = arith.constant 3.200000e+01 : f32
    %106 = vector.broadcast %cst_58 : f32 to vector<16x1xf32>
    %107 = arith.divf %105, %106 : vector<16x1xf32>
    %108 = vector.broadcast %107 : vector<16x1xf32> to vector<16x32xf32>
    %109 = arith.subf %101, %108 : vector<16x32xf32>
    %110 = arith.mulf %109, %109 : vector<16x32xf32>
    %cst_59 = arith.constant dense<0.000000e+00> : vector<16xf32>
    %111 = vector.multi_reduction <add>, %110, %cst_59 [1] : vector<16x32xf32> to vector<16xf32>
    %112 = vector.shape_cast %111 : vector<16xf32> to vector<16x1xf32>
    %cst_60 = arith.constant 3.200000e+01 : f32
    %113 = vector.broadcast %cst_60 : f32 to vector<16x1xf32>
    %114 = arith.divf %112, %113 : vector<16x1xf32>
    %115 = vector.broadcast %107 : vector<16x1xf32> to vector<16x32xf32>
    %116 = arith.subf %101, %115 : vector<16x32xf32>
    %cst_61 = arith.constant 9.99999996E-13 : f32
    %117 = vector.broadcast %cst_61 : f32 to vector<16x1xf32>
    %118 = arith.addf %114, %117 : vector<16x1xf32>
    %119 = math.rsqrt %118 : vector<16x1xf32>
    %120 = vector.broadcast %119 : vector<16x1xf32> to vector<16x32xf32>
    %121 = arith.mulf %116, %120 : vector<16x32xf32>
    %122 = vector.broadcast %102 : vector<1x32xf32> to vector<16x32xf32>
    %123 = arith.mulf %121, %122 : vector<16x32xf32>
    %124 = vector.broadcast %103 : vector<1x32xf32> to vector<16x32xf32>
    %125 = arith.addf %123, %124 : vector<16x32xf32>
    %c0_62 = arith.constant 0 : index
    %c0_63 = arith.constant 0 : index
    %c0_64 = arith.constant 0 : index
    %126 = vector.load %arg6[%c0_62, %c0_63, %c0_64] : memref<1x33x64xf32, #tpu.memory_space<vmem>>, vector<1x32x64xf32>
    %127 = vector.shape_cast %126 : vector<1x32x64xf32> to vector<32x64xf32>
    %cst_65 = arith.constant dense<0.000000e+00> : vector<16x64xf32>
    %128 = tpu.matmul %125, %127, %cst_65 {dimension_numbers = #tpu.dot_dimension_numbers<[1], [0], [0], [1], [0, 0, 1, 1], [], []>} : vector<16x32xf32>, vector<32x64xf32>, vector<16x64xf32> -> vector<16x64xf32>
    %c0_66 = arith.constant 0 : index
    %c32 = arith.constant 32 : index
    %c0_67 = arith.constant 0 : index
    %129 = vector.load %arg6[%c0_66, %c32, %c0_67] : memref<1x33x64xf32, #tpu.memory_space<vmem>>, vector<1x1x64xf32>
    %130 = vector.shape_cast %129 : vector<1x1x64xf32> to vector<1x64xf32>
    %131 = vector.broadcast %130 : vector<1x64xf32> to vector<16x64xf32>
    %132 = arith.addf %128, %131 : vector<16x64xf32>
    %cst_68 = arith.constant 5.000000e-01 : f32
    %133 = vector.broadcast %cst_68 : f32 to vector<16x64xf32>
    %134 = arith.mulf %133, %132 : vector<16x64xf32>
    %cst_69 = arith.constant 4.471500e-02 : f32
    %135 = vector.broadcast %cst_69 : f32 to vector<16x64xf32>
    %136 = arith.mulf %135, %132 : vector<16x64xf32>
    %137 = arith.mulf %136, %132 : vector<16x64xf32>
    %138 = arith.mulf %137, %132 : vector<16x64xf32>
    %139 = arith.addf %132, %138 : vector<16x64xf32>
    %cst_70 = arith.constant 0.797884583 : f32
    %140 = vector.broadcast %cst_70 : f32 to vector<16x64xf32>
    %141 = arith.mulf %140, %139 : vector<16x64xf32>
    %142 = math.tanh %141 : vector<16x64xf32>
    %cst_71 = arith.constant 1.000000e+00 : f32
    %143 = vector.broadcast %cst_71 : f32 to vector<16x64xf32>
    %144 = arith.addf %143, %142 : vector<16x64xf32>
    %145 = arith.mulf %134, %144 : vector<16x64xf32>
    %c0_72 = arith.constant 0 : index
    %c0_73 = arith.constant 0 : index
    %c0_74 = arith.constant 0 : index
    %146 = vector.load %arg7[%c0_72, %c0_73, %c0_74] : memref<1x64x32xf32, #tpu.memory_space<vmem>>, vector<1x64x32xf32>
    %147 = vector.shape_cast %146 : vector<1x64x32xf32> to vector<64x32xf32>
    %cst_75 = arith.constant dense<0.000000e+00> : vector<16x32xf32>
    %148 = tpu.matmul %145, %147, %cst_75 {dimension_numbers = #tpu.dot_dimension_numbers<[1], [0], [0], [1], [0, 0, 1, 1], [], []>} : vector<16x64xf32>, vector<64x32xf32>, vector<16x32xf32> -> vector<16x32xf32>
    %149 = vector.extract_strided_slice %5 {offsets = [5, 0], sizes = [1, 32], strides = [1, 1]} : vector<9x32xf32> to vector<1x32xf32>
    %150 = vector.broadcast %149 : vector<1x32xf32> to vector<16x32xf32>
    %151 = arith.addf %148, %150 : vector<16x32xf32>
    %152 = arith.addf %125, %151 : vector<16x32xf32>
    %153 = vector.extract_strided_slice %5 {offsets = [2, 0], sizes = [1, 32], strides = [1, 1]} : vector<9x32xf32> to vector<1x32xf32>
    %154 = vector.extract_strided_slice %5 {offsets = [3, 0], sizes = [1, 32], strides = [1, 1]} : vector<9x32xf32> to vector<1x32xf32>
    %cst_76 = arith.constant dense<0.000000e+00> : vector<16xf32>
    %155 = vector.multi_reduction <add>, %152, %cst_76 [1] : vector<16x32xf32> to vector<16xf32>
    %156 = vector.shape_cast %155 : vector<16xf32> to vector<16x1xf32>
    %cst_77 = arith.constant 3.200000e+01 : f32
    %157 = vector.broadcast %cst_77 : f32 to vector<16x1xf32>
    %158 = arith.divf %156, %157 : vector<16x1xf32>
    %159 = vector.broadcast %158 : vector<16x1xf32> to vector<16x32xf32>
    %160 = arith.subf %152, %159 : vector<16x32xf32>
    %161 = arith.mulf %160, %160 : vector<16x32xf32>
    %cst_78 = arith.constant dense<0.000000e+00> : vector<16xf32>
    %162 = vector.multi_reduction <add>, %161, %cst_78 [1] : vector<16x32xf32> to vector<16xf32>
    %163 = vector.shape_cast %162 : vector<16xf32> to vector<16x1xf32>
    %cst_79 = arith.constant 3.200000e+01 : f32
    %164 = vector.broadcast %cst_79 : f32 to vector<16x1xf32>
    %165 = arith.divf %163, %164 : vector<16x1xf32>
    %166 = vector.broadcast %158 : vector<16x1xf32> to vector<16x32xf32>
    %167 = arith.subf %152, %166 : vector<16x32xf32>
    %cst_80 = arith.constant 9.99999996E-13 : f32
    %168 = vector.broadcast %cst_80 : f32 to vector<16x1xf32>
    %169 = arith.addf %165, %168 : vector<16x1xf32>
    %170 = math.rsqrt %169 : vector<16x1xf32>
    %171 = vector.broadcast %170 : vector<16x1xf32> to vector<16x32xf32>
    %172 = arith.mulf %167, %171 : vector<16x32xf32>
    %173 = vector.broadcast %153 : vector<1x32xf32> to vector<16x32xf32>
    %174 = arith.mulf %172, %173 : vector<16x32xf32>
    %175 = vector.broadcast %154 : vector<1x32xf32> to vector<16x32xf32>
    %176 = arith.addf %174, %175 : vector<16x32xf32>
    %c0_81 = arith.constant 0 : index
    %c0_82 = arith.constant 0 : index
    %177 = vector.load %arg10[%c0_81, %c0_82] : memref<16x32xf32, #tpu.memory_space<vmem>>, vector<16x32xf32>
    tpu.vector_store %arg10[%c0_81, %c0_82], %176 {strides = array<i32>} : memref<16x32xf32, #tpu.memory_space<vmem>>, vector<16x32xf32>,
    %c1_i32 = arith.constant 1 : i32
    %178 = arith.cmpi eq, %arg0, %c1_i32 : i32
    %179 = arith.extui %178 : i1 to i32
    %c0_i32_83 = arith.constant 0 : i32
    %180 = arith.cmpi ne, %179, %c0_i32_83 : i32
    scf.if %180 {
      %c0_84 = arith.constant 0 : index
      %c0_85 = arith.constant 0 : index
      %181 = vector.load %arg9[%c0_84, %c0_85] : memref<16x32xf32, #tpu.memory_space<vmem>>, vector<16x32xf32>
      tpu.vector_store %arg9[%c0_84, %c0_85], %176 {strides = array<i32>} : memref<16x32xf32, #tpu.memory_space<vmem>>, vector<16x32xf32>,
    } else {
    }
    return
  }
  func.func @transform_0(%arg0: i32) -> (i32, i32) {
    %c0_i32 = arith.constant 0 : i32
    %c0_i32_0 = arith.constant 0 : i32
    %c0_i32_1 = arith.constant 0 : i32
    return %c0_i32, %c0_i32_0 : i32, i32
  }
  func.func @transform_1(%arg0: i32) -> (i32, i32) {
    %c0_i32 = arith.constant 0 : i32
    %c0_i32_0 = arith.constant 0 : i32
    %c0_i32_1 = arith.constant 0 : i32
    return %c0_i32, %c0_i32_0 : i32, i32
  }
  func.func @transform_2(%arg0: i32) -> (i32, i32) {
    %c0_i32 = arith.constant 0 : i32
    %c0_i32_0 = arith.constant 0 : i32
    %c0_i32_1 = arith.constant 0 : i32
    return %c0_i32, %c0_i32_0 : i32, i32
  }
  func.func @transform_3(%arg0: i32) -> (i32, i32, i32, i32) {
    %c0_i32 = arith.constant 0 : i32
    %c0_i32_0 = arith.constant 0 : i32
    %c0_i32_1 = arith.constant 0 : i32
    %c0_i32_2 = arith.constant 0 : i32
    return %arg0, %c0_i32, %c0_i32_0, %c0_i32_1 : i32, i32, i32, i32
  }
  func.func @transform_4(%arg0: i32) -> (i32, i32, i32) {
    %c0_i32 = arith.constant 0 : i32
    %c0_i32_0 = arith.constant 0 : i32
    %c0_i32_1 = arith.constant 0 : i32
    return %arg0, %c0_i32, %c0_i32_0 : i32, i32, i32
  }
  func.func @transform_5(%arg0: i32) -> (i32, i32, i32) {
    %c0_i32 = arith.constant 0 : i32
    %c0_i32_0 = arith.constant 0 : i32
    %c0_i32_1 = arith.constant 0 : i32
    return %arg0, %c0_i32, %c0_i32_0 : i32, i32, i32
  }
  func.func @transform_6(%arg0: i32) -> (i32, i32, i32) {
    %c0_i32 = arith.constant 0 : i32
    %c0_i32_0 = arith.constant 0 : i32
    %c0_i32_1 = arith.constant 0 : i32
    return %arg0, %c0_i32, %c0_i32_0 : i32, i32, i32
  }
  func.func @transform_7(%arg0: i32) -> (i32, i32, i32) {
    %c0_i32 = arith.constant 0 : i32
    %c0_i32_0 = arith.constant 0 : i32
    %c0_i32_1 = arith.constant 0 : i32
    return %arg0, %c0_i32, %c0_i32_0 : i32, i32, i32
  }
  func.func @transform_8(%arg0: i32) -> (i32, i32) {
    %c0_i32 = arith.constant 0 : i32
    %c0_i32_0 = arith.constant 0 : i32
    %c0_i32_1 = arith.constant 0 : i32
    return %c0_i32, %c0_i32_0 : i32, i32
  }
}

</mosaic_0001>

<bundles_post_ra>
// kernel: electra_encoder_forward.1
= control target key start
LH: loop header
LB: loop body
LE: loop exit
PB: predicated region body
PF: predicated region fallthrough
CT: control target
= control target key end

     0   :  { %13 = vsyncpa [#allocation5], 0  ;;  %s3046_s27 = smov 0   ;;  %s3363_s0 = inlined_call_operand.vmem [shape: f32[16,32], index: 0, kind: input, shape index: {}]   ;;  %s3364_s1 = inlined_call_operand.vmem [shape: f32[64,8], index: 1, kind: input, shape index: {}]   ;;  %s3365_s2 = inlined_call_operand.vmem [shape: f32[2,32], index: 2, kind: input, shape index: {}]   ;;  %s3366_s3 = inlined_call_operand.vmem [shape: f32[2,3,32,32], index: 3, kind: input, shape index: {}]   ;;  %s3367_s4 = inlined_call_operand.vmem [shape: f32[2,32,32], index: 4, kind: input, shape index: {}]   ;;  %s3368_s5 = inlined_call_operand.vmem [shape: f32[2,33,64], index: 5, kind: input, shape index: {}]   ;;  %s3369_s6 = inlined_call_operand.vmem [shape: f32[2,64,32], index: 6, kind: input, shape index: {}]   ;;  %s3370_s7 = inlined_call_operand.vmem [shape: f32[2,9,32], index: 7, kind: input, shape index: {}]   ;;  %s3371_s8 = inlined_call_operand.hbm [shape: f32[16,32], index: 8, kind: output, shape index: {}]  }
   0x1 LB: > { %s3052_s28 = sadd.s32 4294967295, %s2989_s27   ;;  %p2531_p0 = scmp.ge.s32.totalorder %s2989_s27, 1  ;;  %s2989_s27 = sphi %s3046_s27, %s19_s27  }
   0x2   : > { %p298_p1 = scmp.lt.s32.totalorder %s2989_s27, 3 }
   0x4   : > { %p299_p2 = pnand %p2531_p0, %p298_p1 }
   0x5   : > { %p347_p3 = scmp.lt.s32.totalorder (!%p299_p2), %s3052_s28, 1  ;;  %p2540_p4 = scmp.ne.s32.totalorder (!%p299_p2), %s3052_s28, 0 }
   0x6   : > { %302 = sbr.rel (%p299_p2) target bundleno = 2897 (0xb51), region = 52 }
   0xd   : > { %s348_s29 = scalar_select %p347_p3, %s3052_s28, 1 }
   0xe   : > { %375 = sbr.rel (%p2540_p4) target bundleno = 333 (0x14d), region = 56  ;;  %v376_v0 = vld [vmem:[%s3363_s0] sm:$0xff] (!%p2540_p4)  ;;  %vm380_vm0 = vcmask (!%p2540_p4), 261120   ;;  %v377_v1 = vld [vmem:[%s3363_s0 + $0x8] sm:$0xff] (!%p2540_p4) }
   0xf   : > { %s2879_s30 = smul.u32 96, %s348_s29  ;;  %s2594_s9 = sshll.u32 %s348_s29, 5  ;;  %v381_v2 = vsel (!%p2540_p4), %vm380_vm0, %v376_v0, 0.0  ;;  %v384_v3 = vsel (!%p2540_p4), %vm380_vm0, %v377_v1, 0.0  ;;  %v2541_v21 = vld [vmem:[%s3365_s2] ss:$0 sm:$0xff] (!%p2540_p4) }
  0x10   : > { %s3061_s12 = scalar_lea.vmem %s3367_s4, %s2594_s9  ;;  %s2880_s13 = smul.u32 40, %s348_s29  ;;  %382 = vadd.xlane.f32.xlu0 (!%p2540_p4), %v381_v2  ;;  %v2542_v23 = vld [vmem:[%s3365_s2 + $0x1] ss:$0 sm:$0xff] (!%p2540_p4) }
  0x11   : > { %s3066_s16 = scalar_lea.vmem %s3366_s3, %s2879_s30  ;;  %s2595_s17 = sshll.u32 %s348_s29, 6 }
  0x12   : > { %s3071_s20 = scalar_lea.vmem %s3368_s5, %s2880_s13  ;;  %s3076_s23 = scalar_lea.vmem %s3369_s6, %s2595_s17 }
  0x13   : > { %s2596_s24 = sshll.u32 %s348_s29, 4 }
  0x14   : > { %s3081_s9 = scalar_lea.vmem %s3370_s7, %s2596_s24  ;;  %385 = vadd.xlane.f32.xlu0 (!%p2540_p4), %v384_v3 }
  0x9d   : > { %v383_v4 = vpop.xlane.xlu0 %382 }
  0x9e   : > { %v388_v5 = vmul.f32 0.03125, %v383_v4 }
  0xa0   : > { %v390_v6 = vsub.f32 %v376_v0, %v388_v5 }
  0xa1   : > { %v386_v7 = vpop.xlane.xlu0 %385 }
  0xa2   : > { %v389_v8 = vmul.f32 0.03125, %v386_v7  ;;  %v392_v9 = vmul.f32 %v390_v6, %v390_v6 }
  0xa4   : > { %v391_v10 = vsub.f32 %v377_v1, %v389_v8  ;;  %v394_v11 = vsel %vm380_vm0, %v392_v9, 0.0 }
  0xa5   : > { %395 = vadd.xlane.f32.xlu1 %v394_v11 }
  0xa6   : > { %v393_v12 = vmul.f32 %v391_v10, %v391_v10 }
  0xa8   : > { %v397_v13 = vsel %vm380_vm0, %v393_v12, 0.0 }
  0xa9   : > { %398 = vadd.xlane.f32.xlu1 %v397_v13 }
 0x132   : > { %v396_v14 = vpop.xlane.xlu1 %395 }
 0x133   : > { %v400_v15 = vmul.f32 0.03125, %v396_v14 }
 0x135   : > { %v402_v16 = vadd.f32 1e-12, %v400_v15 }
 0x136   : > { %v399_v17 = vpop.xlane.xlu1 %398 }
 0x137   : > { %2905 = vrsqrt.f32 %v402_v16  ;;  %v401_v18 = vmul.f32 0.03125, %v399_v17 }
 0x139   : > { %v403_v19 = vadd.f32 1e-12, %v401_v18 }
 0x13b   : > { %2907 = vrsqrt.f32 %v403_v19 }
 0x141   : > { %v2906_v20 = vpop.eup %2905 }
 0x142   : > { %v406_v22 = vmul.f32 %v2906_v20, %v390_v6 }
 0x144   : > { %v412_v24 = vmul.f32 %v2541_v21, %v406_v22 }
 0x145   : > { %v2908_v25 = vpop.eup %2907 }
 0x146   : > { %v418_v26 = vadd.f32 %v2542_v23, %v412_v24  ;;  %v407_v27 = vmul.f32 %v2908_v25, %v391_v10 }
 0x148   : > { %420 = vst.msk [vmem:[#allocation2] sm:$0xff] %vm380_vm0, %v418_v26  ;;  %v413_v28 = vmul.f32 %v2541_v21, %v407_v27 }
 0x14a   : > { %v419_v29 = vadd.f32 %v2542_v23, %v413_v28 }
 0x14c   : > { %421 = vst.msk [vmem:[#allocation2 + $0x8] sm:$0xff] %vm380_vm0, %v419_v29 }
 0x14d PF: > { %v426_v30 = vld [vmem:[%s3066_s16] sm:$0xff]  ;;  %v427_v31 = vld [vmem:[%s3066_s16 + $0x8] sm:$0xff]  ;;  %v428_v32 = vld [vmem:[%s3066_s16 + $0x10] sm:$0xff]  ;;  %vm434_vm1 = vcmask 261120   ;;  %v2991_v44 = vmov 0.0   ;;  %vm2992_vm2 = vmmov 0   ;;  %v430_v51 = vlaneseq }
 0x14e   : > { %v2823_v33 = vpack.c.bf16 %v427_v31, %v426_v30  ;;  %v429_v34 = vld [vmem:[%s3066_s16 + $0x18] sm:$0xff]  ;;  %v2545_v37 = vld [vmem:[%s3066_s16 + $0x20] sm:$0xff]  ;;  %v2546_v38 = vld [vmem:[%s3066_s16 + $0x28] sm:$0xff]  ;;  %s2994_s18 = smov 120   ;;  %vm686_vm3 = vcmask 64512   ;;  %s2995_s19 = smov 112  }
 0x14f   : > { %v3106_v35 = vld [vmem:[#allocation2] sm:$0xff]  ;;  %v2827_v36 = vpack.c.bf16 %v429_v34, %v428_v32  ;;  %v2831_v39 = vpack.c.bf16 %v2546_v38, %v2545_v37  ;;  %v2547_v40 = vld [vmem:[%s3066_s16 + $0x30] sm:$0xff]  ;;  %v2548_v41 = vld [vmem:[%s3066_s16 + $0x38] sm:$0xff]  ;;  %v3136_v52 = vshrl.u32 %v430_v51, 7  ;;  %vm1566_vm4 = vcmask 130112   ;;  %p2589_p5 = scmp.ne.s32.totalorder %s3052_s28, 1 }
 0x150   : > { %2677 = vmatprep.mubr.msk.f32.mxu1 %vm434_vm1, %v3106_v35  ;;  %2699 = vmatprep.mubr.msk.f32.mxu0 %vm434_vm1, %v3106_v35  ;;  %v2835_v43 = vpack.c.bf16 %v2548_v41, %v2547_v40  ;;  %v2551_v45 = vld [vmem:[%s3066_s16 + $0x40] sm:$0xff]  ;;  %v2552_v46 = vld [vmem:[%s3066_s16 + $0x48] sm:$0xff]  ;;  %v2553_v47 = vld [vmem:[%s3066_s16 + $0x50] sm:$0xff]  ;;  %vm1648_vm5 = vcmask 195712   ;;  %vm1730_vm6 = vcmask 261312   ;;  %vm2302_vm7 = vcmask 523264  }
 0x151   : > { %2824 = vmatprep.subr.bf16.mxu1 %v2823_v33  ;;  %v2839_v48 = vpack.c.bf16 %v2552_v46, %v2551_v45  ;;  %v2554_v49 = vld [vmem:[%s3066_s16 + $0x58] sm:$0xff]  ;;  %v432_v53 = vsub.s32 6, %v3136_v52  ;;  %v3140_v54 = vld [vmem:[%s3081_s9] sm:$0xff]  ;;  %v523_v59 = vsub.s32 7, %v3136_v52  ;;  %s2993_s16 = smov 104   ;;  %v1308_v26 = vld [vmem:[%s3364_s1 + $0x8] sm:$0xff] }
 0x152   : > { %2826 = vmatpush3.bf16.msra.mxu1 %v2823_v33  ;;  %v2843_v50 = vpack.c.bf16 %v2554_v49, %v2553_v47  ;;  %v2555_v4 = vld [vmem:[%s3081_s9 + $0x8] ss:$0 sm:$0xff]  ;;  %v1307_v21 = vld [vmem:[%s3364_s1] sm:$0xff]  ;;  %v1309_v27 = vld [vmem:[%s3364_s1 + $0x10] sm:$0xff] }
 0x153   : > { %2828 = vmatprep.subr.bf16.mxu1 %v2827_v36  ;;  %v3116_v42 = vld [vmem:[#allocation2 + $0x8] sm:$0xff]  ;;  %2840 = vmatprep.subr.bf16.mxu0 %v2839_v48  ;;  %v433_v55 = vrot.slane %v3140_v54, %v432_v53  ;;  %v524_v61 = vrot.slane %v3140_v54, %v523_v59  ;;  %v1310_v34 = vld [vmem:[%s3364_s1 + $0x18] sm:$0xff]  ;;  %v1311_v37 = vld [vmem:[%s3364_s1 + $0x20] sm:$0xff] }
 0x154   : > { %2842 = vmatpush3.bf16.msra.mxu0 %v2839_v48  ;;  %v1312_v47 = vld [vmem:[%s3364_s1 + $0x28] sm:$0xff] }
 0x155   : > { %2844 = vmatprep.subr.bf16.mxu0 %v2843_v50 }
 0x156   : > { %2830 = vmatpush3.bf16.msra.mxu1 %v2827_v36 }
 0x157   : > { %2832 = vmatprep.subr.bf16.mxu1 %v2831_v39 }
 0x158   : > { %2846 = vmatpush3.bf16.msra.mxu0 %v2843_v50 }
 0x159   : > { %2678 = vmatmul.mubr.msk.f32.vlgmr.msra.gmra.mrb[0].mxu1 %vm434_vm1, %v3116_v42  ;;  %2712 = vmatprep.subr.mxu0 %v2991_v44 }
 0x15a   : > { %2834 = vmatpush3.bf16.msra.mxu1 %v2831_v39  ;;  %2688 = vmatprep.mubr.msk.f32.mxu1 %vm434_vm1, %v3106_v35 }
 0x15b   : > { %2836 = vmatprep.subr.bf16.mxu1 %v2835_v43  ;;  %2700 = vmatmul.mubr.msk.f32.vlgmr.msra.gmra.mrb[0].mxu0 %vm434_vm1, %v3116_v42 }
 0x15c   : > { %2714 = vmatprep.mubr.msk.f32.mxu0 %vm2992_vm2, %v2991_v44 }
 0x15e   : > { %2838 = vmatpush3.bf16.msra.mxu1 %v2835_v43 }
 0x15f   : > { %2702 = vmatprep.subr.mxu1 %v2991_v44 }
 0x161   : > { %2689 = vmatmul.mubr.msk.f32.vlgmr.msra.gmra.mrb[2].mxu1 %vm434_vm1, %v3116_v42 }
 0x162   : > { %2704 = vmatprep.mubr.msk.f32.mxu1 %vm2992_vm2, %v2991_v44 }
 0x22c   : > { %v2679_v56 = vpop.f32.mrb[0].mxu1 }
 0x22d   : > { %v507_v57 = vpop.f32.mrb[1].mxu1  ;;  %v513_v1 = vadd.f32 %v2679_v56, %v433_v55  ;;  %v1313_v56 = vld [vmem:[%s3364_s1 + $0x30] sm:$0xff] }
 0x22e   : > { %v508_v58 = vadd.f32 %v507_v57, %v433_v55  ;;  %v2701_v7 = vpop.f32.mrb[0].mxu0  ;;  %v1314_v55 = vld [vmem:[%s3364_s1 + $0x38] sm:$0xff] }
 0x22f   : > { %v685_v2 = vmul.f32 0.35355338, %v513_v1  ;;  %v3163_v8 = vadd.f32 %v2701_v7, %v2555_v4  ;;  %v675_v9 = vpop.f32.mrb[1].mxu0 }
 0x230   : > { %v684_v60 = vmul.f32 0.35355338, %v508_v58  ;;  %v676_v18 = vadd.f32 %v2555_v4, %v675_v9 }
 0x232   : > { %919 = vrot.lane.b32.xlu1 %v684_v60, %s2993_s16  ;;  %763 = vrot.lane.b32.xlu0 %v684_v60, %s2994_s18 }
 0x234   : > { %v2690_v62 = vpop.f32.mrb[2].mxu1 }
 0x235   : > { %v591_v63 = vpop.f32.mrb[3].mxu1  ;;  %v597_v3 = vadd.f32 %v2690_v62, %v524_v61 }
 0x236   : > { %v592_v0 = vadd.f32 %v591_v63, %v524_v61 }
 0x238   : > { %2703 = vmatpush3.xpose.msk.msra.mxu1 %vm686_vm3, %v592_v0  ;;  %843 = vrot.lane.b32.xlu1 %v592_v0, %s2995_s19 }
 0x239   : > { %765 = vrot.lane.b32.xlu0 %v592_v0, %s2994_s18  ;;  %2707 = vmatprep.subr.mxu1 %v2991_v44 }
 0x23b   : > { %2705 = vmatmul.mubr.msk.f32.vlgmr.msra.gmra.mrb[4].mxu1 %vm686_vm3, %v684_v60 }
 0x23c   : > { %921 = vrot.lane.b32.xlu1 %v592_v0, %s2993_s16  ;;  %2709 = vmatprep.mubr.msk.f32.mxu1 %vm2992_vm2, %v2991_v44 }
 0x23d   : > { %841 = vrot.lane.b32.xlu0 %v684_v60, %s2995_s19 }
 0x240   : > { %1073 = vrot.lane.b32.xlu1 %v685_v2, %s2994_s18 }
 0x241   : > { %1075 = vrot.lane.b32.xlu0 %v597_v3, %s2994_s18 }
 0x244   : > { %1231 = vrot.lane.b32.xlu1 %v597_v3, %s2993_s16 }
 0x245   : > { %1153 = vrot.lane.b32.xlu0 %v597_v3, %s2995_s19 }
 0x248   : > { %1229 = vrot.lane.b32.xlu1 %v685_v2, %s2993_s16 }
 0x249   : > { %1151 = vrot.lane.b32.xlu0 %v685_v2, %s2995_s19 }
 0x2a4   : > { %v920_v5 = vpop.permute.xlu1 %919  ;;  %v764_v6 = vpop.permute.xlu0 %763 }
 0x2aa   : > { %v844_v10 = vpop.permute.xlu1 %843 }
 0x2ab   : > { %v766_v11 = vpop.permute.xlu0 %765  ;;  %2713 = vmatpush3.xpose.msk.msra.mxu0 %vm686_vm3, %v844_v10 }
 0x2ac   : > { %2708 = vmatpush3.xpose.msk.msra.mxu1 %vm686_vm3, %v766_v11  ;;  %2722 = vmatprep.subr.mxu0 %v2991_v44 }
 0x2ad   : > { %2717 = vmatprep.subr.mxu1 %v2991_v44 }
 0x2ae   : > { %v922_v12 = vpop.permute.xlu1 %921 }
 0x2af   : > { %v842_v13 = vpop.permute.xlu0 %841  ;;  %2710 = vmatmul.mubr.msk.f32.vlgmr.msra.gmra.mrb[6].mxu1 %vm686_vm3, %v764_v6 }
 0x2b0   : > { %2715 = vmatmul.mubr.msk.f32.vlgmr.msra.gmra.mrb[2].mxu0 %vm686_vm3, %v842_v13  ;;  %2718 = vmatpush3.xpose.msk.msra.mxu1 %vm686_vm3, %v922_v12 }
 0x2b1   : > { %2723 = vmatpush3.xpose.msk.msra.mxu0 %vm686_vm3, %v597_v3  ;;  %2719 = vmatprep.mubr.msk.f32.mxu1 %vm2992_vm2, %v2991_v44 }
 0x2b2   : > { %v1074_v14 = vpop.permute.xlu1 %1073  ;;  %2724 = vmatprep.mubr.msk.f32.mxu0 %vm2992_vm2, %v2991_v44  ;;  %2727 = vmatprep.subr.mxu1 %v2991_v44 }
 0x2b3   : > { %v1076_v15 = vpop.permute.xlu0 %1075  ;;  %2720 = vmatmul.mubr.msk.f32.vlgmr.msra.gmra.mrb[8].mxu1 %vm686_vm3, %v920_v5  ;;  %2732 = vmatprep.subr.mxu0 %v2991_v44 }
 0x2b4   : > { %2725 = vmatmul.mubr.msk.f32.vlgmr.msra.gmra.mrb[4].mxu0 %vm686_vm3, %v685_v2  ;;  %2728 = vmatpush3.xpose.msk.msra.mxu1 %vm686_vm3, %v1076_v15 }
 0x2b5   : > { %2729 = vmatprep.mubr.msk.f32.mxu1 %vm2992_vm2, %v2991_v44  ;;  %2737 = vmatprep.subr.mxu1 %v2991_v44 }
 0x2b6   : > { %v1232_v16 = vpop.permute.xlu1 %1231  ;;  %2734 = vmatprep.mubr.msk.f32.mxu0 %vm2992_vm2, %v2991_v44 }
 0x2b7   : > { %v1154_v17 = vpop.permute.xlu0 %1153  ;;  %2730 = vmatmul.mubr.msk.f32.vlgmr.msra.gmra.mrb[10].mxu1 %vm686_vm3, %v1074_v14 }
 0x2b8   : > { %2733 = vmatpush3.xpose.msk.msra.mxu0 %vm686_vm3, %v1154_v17  ;;  %2738 = vmatpush3.xpose.msk.msra.mxu1 %vm686_vm3, %v1232_v16 }
 0x2b9   : > { %2739 = vmatprep.mubr.msk.f32.mxu1 %vm2992_vm2, %v2991_v44  ;;  %2742 = vmatprep.subr.mxu0 %v2991_v44 }
 0x2ba   : > { %v1230_v19 = vpop.permute.xlu1 %1229  ;;  %2747 = vmatprep.subr.mxu1 %v2991_v44 }
 0x2bb   : > { %v1152_v20 = vpop.permute.xlu0 %1151  ;;  %2740 = vmatmul.mubr.msk.f32.vlgmr.msra.gmra.mrb[12].mxu1 %vm686_vm3, %v1230_v19 }
 0x2bc   : > { %2735 = vmatmul.mubr.msk.f32.vlgmr.msra.gmra.mrb[6].mxu0 %vm686_vm3, %v1152_v20  ;;  %2749 = vmatprep.mubr.msk.f32.mxu1 %vm2992_vm2, %v2991_v44 }
 0x2bd   : > { %2743 = vmatpush3.msra.mxu0 %v676_v18  ;;  %2744 = vmatprep.mubr.msk.f32.mxu0 %vm2992_vm2, %v2991_v44 }
 0x2be   : > { %2752 = vmatprep.subr.mxu0 %v2991_v44 }
 0x30e   : > { %v759_v22 = vpop.f32.mrb[4].mxu1 }
 0x30f   : > { %v1315_v23 = vadd.f32 %v1307_v21, %v759_v22  ;;  %v2706_v24 = vpop.f32.mrb[5].mxu1 }
 0x311   : > { %v1323_v25 = vsel %vm686_vm3, %v1315_v23, -inf }
 0x312   : > { %1324 = vmax.xlane.f32.xlu0 %v1323_v25 }
 0x382   : > { %v837_v28 = vpop.f32.mrb[6].mxu1 }
 0x383   : > { %v1316_v29 = vadd.f32 %v1308_v26, %v837_v28  ;;  %v2711_v30 = vpop.f32.mrb[7].mxu1  ;;  %v915_v31 = vpop.f32.mrb[2].mxu0 }
 0x384   : > { %v1317_v32 = vadd.f32 %v1309_v27, %v915_v31  ;;  %v2716_v33 = vpop.f32.mrb[3].mxu0 }
 0x385   : > { %v1326_v36 = vsel %vm686_vm3, %v1316_v29, -inf }
 0x386   : > { %1327 = vmax.xlane.f32.xlu1 %v1326_v36  ;;  %v993_v38 = vpop.f32.mrb[8].mxu1  ;;  %v1329_v39 = vsel %vm686_vm3, %v1317_v32, -inf }
 0x387   : > { %v1318_v40 = vadd.f32 %v1310_v34, %v993_v38  ;;  %v1069_v41 = vpop.f32.mrb[4].mxu0  ;;  %1330 = vmax.xlane.f32.xlu0 %v1329_v39  ;;  %v2721_v43 = vpop.f32.mrb[9].mxu1 }
 0x388   : > { %v1319_v45 = vadd.f32 %v1311_v37, %v1069_v41  ;;  %v2726_v46 = vpop.f32.mrb[5].mxu0 }
 0x389   : > { %v1332_v48 = vsel %vm686_vm3, %v1318_v40, -inf }
 0x38a   : > { %v1147_v49 = vpop.f32.mrb[10].mxu1  ;;  %v1335_v50 = vsel %vm686_vm3, %v1319_v45, -inf }
 0x38b   : > { %v1320_v51 = vadd.f32 %v1312_v47, %v1147_v49  ;;  %1336 = vmax.xlane.f32.xlu1 %v1335_v50  ;;  %1333 = vmax.xlane.f32.xlu0 %v1332_v48  ;;  %v2731_v53 = vpop.f32.mrb[11].mxu1 }
 0x38d   : > { %v1338_v57 = vsel %vm686_vm3, %v1320_v51, -inf }
 0x38e   : > { %v1303_v58 = vpop.f32.mrb[12].mxu1 }
 0x38f   : > { %v1225_v59 = vpop.f32.mrb[6].mxu0  ;;  %1339 = vmax.xlane.f32.xlu0 %v1338_v57  ;;  %v1322_v60 = vadd.f32 %v1314_v55, %v1303_v58  ;;  %v2741_v61 = vpop.f32.mrb[13].mxu1 }
 0x390   : > { %v1321_v62 = vadd.f32 %v1313_v56, %v1225_v59  ;;  %v2736_v63 = vpop.f32.mrb[7].mxu0 }
 0x391   : > { %v1344_v0 = vsel %vm686_vm3, %v1322_v60, -inf }
 0x392   : > { %v1341_v1 = vsel %vm686_vm3, %v1321_v62, -inf }
 0x393   : > { %1342 = vmax.xlane.f32.xlu1 %v1341_v1  ;;  %1345 = vmax.xlane.f32.xlu0 %v1344_v0 }
 0x39f   : > { %v1325_v2 = vpop.xlane.xlu0 %1324 }
 0x3a0   : > { %v1347_v3 = vsub.f32 %v1315_v23, %v1325_v2 }
 0x3a2   : > { %v1355_v4 = vmul.f32 1.442695, %v1347_v3 }
 0x3a4   : > { %1486 = vrot.lane.b32.xlu1 %v676_v18, %s2994_s18  ;;  %2909 = vpow2.f32 %v1355_v4 }
 0x3a8   : > { %1650 = vrot.lane.b32.xlu1 %v676_v18, %s2993_s16 }
 0x3a9   : > { %1568 = vrot.lane.b32.xlu0 %v676_v18, %s2995_s19 }
 0x3ac   : > { %1807 = vrot.lane.b32.xlu1 %v3163_v8, %s2994_s18  ;;  %s2997_s18 = smov 16  }
 0x3ae   : > { %v2910_v5 = vpop.eup %2909 }
 0x3af   : > { %v1371_v6 = vsel %vm686_vm3, %v2910_v5, 0.0 }
 0x3d0   : > { %1372 = vadd.xlane.f32.xlu1 %v1371_v6 }
 0x413   : > { %v1328_v7 = vpop.xlane.xlu1 %1327 }
 0x414   : > { %v1348_v9 = vsub.f32 %v1316_v29, %v1328_v7  ;;  %v1331_v10 = vpop.xlane.xlu0 %1330 }
 0x415   : > { %v1349_v11 = vsub.f32 %v1317_v32, %v1331_v10 }
 0x416   : > { %v1357_v12 = vmul.f32 1.442695, %v1348_v9 }
 0x417   : > { %v1359_v13 = vmul.f32 1.442695, %v1349_v11 }
 0x418   : > { %2911 = vpow2.f32 %v1357_v12  ;;  %v1337_v14 = vpop.xlane.xlu1 %1336  ;;  %v1334_v15 = vpop.xlane.xlu0 %1333 }
 0x419   : > { %2913 = vpow2.f32 %v1359_v13  ;;  %v1351_v16 = vsub.f32 %v1319_v45, %v1337_v14  ;;  %v1350_v17 = vsub.f32 %v1318_v40, %v1334_v15 }
 0x41b   : > { %v1363_v18 = vmul.f32 1.442695, %v1351_v16  ;;  %v1361_v19 = vmul.f32 1.442695, %v1350_v17 }
 0x41c   : > { %v1340_v20 = vpop.xlane.xlu0 %1339 }
 0x41d   : > { %2915 = vpow2.f32 %v1363_v18  ;;  %v1352_v21 = vsub.f32 %v1320_v51, %v1340_v20 }
 0x41e   : > { %2917 = vpow2.f32 %v1361_v19  ;;  %v2052_v19 = vld [vmem:[%s3061_s12] sm:$0xff] }
 0x41f   : > { %v1365_v22 = vmul.f32 1.442695, %v1352_v21 }
 0x420   : > { %v1343_v23 = vpop.xlane.xlu1 %1342  ;;  %v1346_v24 = vpop.xlane.xlu0 %1345 }
 0x421   : > { %2919 = vpow2.f32 %v1365_v22  ;;  %v1353_v25 = vsub.f32 %v1321_v62, %v1343_v23  ;;  %v1354_v26 = vsub.f32 %v1322_v60, %v1346_v24  ;;  %v2054_v22 = vld [vmem:[%s3061_s12 + $0x10] sm:$0xff]  ;;  %v2055_v23 = vld [vmem:[%s3061_s12 + $0x18] sm:$0xff] }
 0x422   : > { %v2912_v27 = vpop.eup %2911  ;;  %v2851_v24 = vpack.c.bf16 %v2055_v23, %v2054_v22 }
 0x423   : > { %v2914_v28 = vpop.eup %2913  ;;  %v1367_v29 = vmul.f32 1.442695, %v1353_v25  ;;  %v1369_v30 = vmul.f32 1.442695, %v1354_v26  ;;  %v1374_v31 = vsel %vm686_vm3, %v2912_v27, 0.0 }
 0x424   : > { %v1487_v32 = vpop.permute.xlu1 %1486  ;;  %1375 = vadd.xlane.f32.xlu0 %v1374_v31  ;;  %v1377_v33 = vsel %vm686_vm3, %v2914_v28, 0.0  ;;  %v1569_v53 = vpop.permute.xlu0 %1568 }
 0x425   : > { %2921 = vpow2.f32 %v1367_v29  ;;  %1378 = vadd.xlane.f32.xlu1 %v1377_v33  ;;  %2748 = vmatpush3.msra.mxu1 %v1487_v32 }
 0x426   : > { %2923 = vpow2.f32 %v1369_v30  ;;  %2757 = vmatprep.subr.mxu1 %v2991_v44 }
 0x427   : > { %v2916_v34 = vpop.eup %2915 }
 0x428   : > { %v2918_v36 = vpop.eup %2917  ;;  %v1383_v37 = vsel %vm686_vm3, %v2916_v34, 0.0  ;;  %v1651_v47 = vpop.permute.xlu1 %1650 }
 0x429   : > { %1384 = vadd.xlane.f32.xlu1 %v1383_v37  ;;  %v1380_v38 = vsel %vm686_vm3, %v2918_v36, 0.0 }
 0x42a   : > { %1381 = vadd.xlane.f32.xlu0 %v1380_v38 }
 0x42b   : > { %v2920_v39 = vpop.eup %2919 }
 0x42c   : > { %v1386_v40 = vsel %vm686_vm3, %v2920_v39, 0.0  ;;  %v1808_v48 = vpop.permute.xlu1 %1807 }
 0x42e   : > { %1387 = vadd.xlane.f32.xlu0 %v1386_v40 }
 0x42f   : > { %v3245_v41 = vpop.eup %2921 }
 0x430   : > { %v3247_v43 = vpop.eup %2923  ;;  %v1389_v45 = vsel %vm686_vm3, %v3245_v41, 0.0 }
 0x431   : > { %1390 = vadd.xlane.f32.xlu1 %v1389_v45  ;;  %v1392_v46 = vsel %vm686_vm3, %v3247_v43, 0.0 }
 0x432   : > { %1393 = vadd.xlane.f32.xlu0 %v1392_v46  ;;  %v2058_v46 = vsub.s32 4, %v3136_v52 }
 0x442   : > { %1969 = vrot.lane.b32.xlu1 %v3163_v8, %s2993_s16  ;;  %s2996_s16 = smov 8  }
 0x448   : > { %1888 = vrot.lane.b32.xlu0 %v3163_v8, %s2995_s19  ;;  %s2998_s19 = smov 24  }
 0x45d   : > { %v1373_v49 = vpop.xlane.xlu1 %1372 }
 0x45e   : > { %2925 = vrcp.f32 %v1373_v49 }
 0x468   : > { %v2926_v50 = vpop.eup %2925 }
 0x469   : > { %v1396_v51 = vmul.f32 %v2926_v50, %v2910_v5 }
 0x46b   : > { %2745 = vmatmul.mubr.msk.f32.vlgmr.msra.gmra.mrb[8].mxu0 %vm686_vm3, %v1396_v51 }
 0x46c   : > { %2753 = vmatpush3.msra.mxu0 %v1569_v53  ;;  %2754 = vmatprep.mubr.msk.f32.mxu0 %vm2992_vm2, %v2991_v44 }
 0x46d   : > { %2762 = vmatprep.subr.mxu0 %v2991_v44 }
 0x4b1   : > { %v1376_v55 = vpop.xlane.xlu0 %1375 }
 0x4b2   : > { %2927 = vrcp.f32 %v1376_v55  ;;  %v1379_v56 = vpop.xlane.xlu1 %1378 }
 0x4b3   : > { %2929 = vrcp.f32 %v1379_v56 }
 0x4b6   : > { %v1385_v57 = vpop.xlane.xlu1 %1384 }
 0x4b7   : > { %2931 = vrcp.f32 %v1385_v57  ;;  %v1382_v58 = vpop.xlane.xlu0 %1381 }
 0x4b8   : > { %2933 = vrcp.f32 %v1382_v58 }
 0x4bb   : > { %v1388_v59 = vpop.xlane.xlu0 %1387 }
 0x4bc   : > { %v2928_v60 = vpop.eup %2927  ;;  %2935 = vrcp.f32 %v1388_v59 }
 0x4bd   : > { %v2930_v61 = vpop.eup %2929  ;;  %v1398_v62 = vmul.f32 %v2928_v60, %v2912_v27 }
 0x4be   : > { %v1400_v63 = vmul.f32 %v2930_v61, %v2914_v28  ;;  %v1391_v0 = vpop.xlane.xlu1 %1390 }
 0x4bf   : > { %2937 = vrcp.f32 %v1391_v0  ;;  %v1394_v1 = vpop.xlane.xlu0 %1393  ;;  %2750 = vmatmul.mubr.msk.f32.vlgmr.msra.gmra.mrb[14].mxu1 %vm686_vm3, %v1398_v62 }
 0x4c0   : > { %2939 = vrcp.f32 %v1394_v1  ;;  %2758 = vmatpush3.msra.mxu1 %v1651_v47  ;;  %2755 = vmatmul.mubr.msk.f32.vlgmr.msra.gmra.mrb[10].mxu0 %vm686_vm3, %v1400_v63  ;;  %v2059_v47 = vrot.slane %v3140_v54, %v2058_v46 }
 0x4c1   : > { %v2932_v2 = vpop.eup %2931  ;;  %2763 = vmatpush3.msra.mxu0 %v3163_v8  ;;  %2759 = vmatprep.mubr.msk.f32.mxu1 %vm2992_vm2, %v2991_v44 }
 0x4c2   : > { %v2934_v3 = vpop.eup %2933  ;;  %v1404_v4 = vmul.f32 %v2932_v2, %v2916_v34  ;;  %2764 = vmatprep.mubr.msk.f32.mxu0 %vm2992_vm2, %v2991_v44  ;;  %2767 = vmatprep.subr.mxu1 %v2991_v44  ;;  %v1970_v10 = vpop.permute.xlu1 %1969  ;;  %v2182_v2 = vld [vmem:[%s3071_s20] sm:$0xff] }
 0x4c3   : > { %v1402_v5 = vmul.f32 %v2934_v3, %v2918_v36  ;;  %v1889_v6 = vpop.permute.xlu0 %1888  ;;  %2772 = vmatprep.subr.mxu0 %v2991_v44  ;;  %v2183_v3 = vld [vmem:[%s3071_s20 + $0x8] sm:$0xff] }
 0x4c4   : > { %2765 = vmatmul.mubr.msk.f32.vlgmr.msra.gmra.mrb[12].mxu0 %vm686_vm3, %v1404_v4  ;;  %v2855_v4 = vpack.c.bf16 %v2183_v3, %v2182_v2 }
 0x4c5   : > { %2760 = vmatmul.mubr.msk.f32.vlgmr.msra.gmra.mrb[16].mxu1 %vm686_vm3, %v1402_v5  ;;  %2773 = vmatpush3.msra.mxu0 %v1889_v6  ;;  %v2184_v5 = vld [vmem:[%s3071_s20 + $0x10] sm:$0xff]  ;;  %v2185_v6 = vld [vmem:[%s3071_s20 + $0x18] sm:$0xff] }
 0x4c6   : > { %v2936_v8 = vpop.eup %2935  ;;  %2768 = vmatpush3.msra.mxu1 %v1808_v48  ;;  %2769 = vmatprep.mubr.msk.f32.mxu1 %vm2992_vm2, %v2991_v44 }
 0x4c7   : > { %v1406_v7 = vmul.f32 %v2936_v8, %v2920_v39  ;;  %2777 = vmatprep.subr.mxu1 %v2991_v44  ;;  %2774 = vmatprep.mubr.msk.f32.mxu0 %vm2992_vm2, %v2991_v44  ;;  %v2859_v8 = vpack.c.bf16 %v2185_v6, %v2184_v5 }
 0x4c9   : > { %v2938_v9 = vpop.eup %2937  ;;  %2770 = vmatmul.mubr.msk.f32.vlgmr.msra.gmra.mrb[18].mxu1 %vm686_vm3, %v1406_v7 }
 0x4ca   : > { %v2940_v11 = vpop.eup %2939  ;;  %v1408_v12 = vmul.f32 %v2938_v9, %v3245_v41  ;;  %2778 = vmatpush3.msra.mxu1 %v1970_v10  ;;  %2779 = vmatprep.mubr.msk.f32.mxu1 %vm2992_vm2, %v2991_v44  ;;  %v2053_v44 = vld [vmem:[%s3061_s12 + $0x8] sm:$0xff] }
 0x4cb   : > { %v1410_v13 = vmul.f32 %v2940_v11, %v3247_v43  ;;  %v2847_v21 = vpack.c.bf16 %v2053_v44, %v2052_v19  ;;  %2856 = vmatprep.subr.bf16.mxu1 %v2855_v4 }
 0x4cc   : > { %2775 = vmatmul.mubr.msk.f32.vlgmr.msra.gmra.mrb[14].mxu0 %vm686_vm3, %v1408_v12 }
 0x4cd   : > { %2780 = vmatmul.mubr.msk.f32.vlgmr.msra.gmra.mrb[20].mxu1 %vm686_vm3, %v1410_v13  ;;  %2848 = vmatprep.subr.bf16.mxu0 %v2847_v21 }
 0x4ce   : > { %2850 = vmatpush3.bf16.msra.mxu0 %v2847_v21  ;;  %2858 = vmatpush3.bf16.msra.mxu1 %v2855_v4 }
 0x4cf   : > { %2852 = vmatprep.subr.bf16.mxu0 %v2851_v24  ;;  %2860 = vmatprep.subr.bf16.mxu1 %v2859_v8 }
 0x4d2   : > { %2854 = vmatpush3.bf16.msra.mxu0 %v2851_v24  ;;  %2862 = vmatpush3.bf16.msra.mxu1 %v2859_v8 }
 0x53e   : > { %v1480_v14 = vpop.f32.mrb[8].mxu0 }
 0x53f   : > { %1484 = vst.msk [vmem:[#allocation3] sm:$0xff] %vm686_vm3, %v1480_v14  ;;  %v2746_v15 = vpop.f32.mrb[9].mxu0  ;;  %v2172_v14 = vsub.s32 0, %v3136_v52 }
 0x540   : > { %v2178_v15 = vsub.s32 1, %v3136_v52 }
 0x542   : > { %v2179_v19 = vrot.slane %v3140_v54, %v2178_v15 }
 0x592   : > { %v1558_v16 = vpop.f32.mrb[14].mxu1 }
 0x593   : > { %v1640_v17 = vpop.f32.mrb[10].mxu0  ;;  %1563 = vrot.lane.b32.xlu0 %v1558_v16, %s2996_s16  ;;  %v2751_v18 = vpop.f32.mrb[15].mxu1  ;;  %v2173_v16 = vrot.slane %v3140_v54, %v2172_v14 }
 0x594   : > { %1645 = vrot.lane.b32.xlu1 %v1640_v17, %s2997_s18  ;;  %v2756_v20 = vpop.f32.mrb[11].mxu0 }
 0x597   : > { %v1801_v25 = vpop.f32.mrb[12].mxu0 }
 0x598   : > { %v1722_v26 = vpop.f32.mrb[16].mxu1  ;;  %1805 = vst.msk [vmem:[#allocation3 + $0x8] sm:$0xff] %vm686_vm3, %v1801_v25  ;;  %v2766_v27 = vpop.f32.mrb[13].mxu0  ;;  %v2290_v25 = vld [vmem:[%s3076_s23] sm:$0xff] }
 0x599   : > { %1727 = vrot.lane.b32.xlu1 %v1722_v26, %s2998_s19  ;;  %v2761_v28 = vpop.f32.mrb[17].mxu1  ;;  %v2291_v26 = vld [vmem:[%s3076_s23 + $0x8] sm:$0xff] }
 0x59a   : > { %v2863_v27 = vpack.c.bf16 %v2291_v26, %v2290_v25  ;;  %v2292_v28 = vld [vmem:[%s3076_s23 + $0x10] sm:$0xff]  ;;  %v2420_v25 = vsub.s32 3, %v3136_v52 }
 0x59c   : > { %v1879_v29 = vpop.f32.mrb[18].mxu1  ;;  %2864 = vmatprep.subr.bf16.mxu0 %v2863_v27 }
 0x59d   : > { %1884 = vrot.lane.b32.xlu0 %v1879_v29, %s2996_s16  ;;  %v2771_v30 = vpop.f32.mrb[19].mxu1  ;;  %v2293_v29 = vld [vmem:[%s3076_s23 + $0x18] sm:$0xff] }
 0x59e   : > { %v2867_v30 = vpack.c.bf16 %v2293_v29, %v2292_v28  ;;  %v2421_v29 = vrot.slane %v3140_v54, %v2420_v25 }
 0x59f   : > { %v1960_v31 = vpop.f32.mrb[14].mxu0 }
 0x5a0   : > { %v2041_v32 = vpop.f32.mrb[20].mxu1  ;;  %v2776_v33 = vpop.f32.mrb[15].mxu0 }
 0x5a1   : > { %1965 = vrot.lane.b32.xlu0 %v1960_v31, %s2997_s18  ;;  %2046 = vrot.lane.b32.xlu1 %v2041_v32, %s2998_s19  ;;  %v2781_v34 = vpop.f32.mrb[21].mxu1  ;;  %v2294_v31 = vld [vmem:[%s3076_s23 + $0x20] sm:$0xff]  ;;  %v2295_v32 = vld [vmem:[%s3076_s23 + $0x28] sm:$0xff] }
 0x5a2   : > { %v2871_v33 = vpack.c.bf16 %v2295_v32, %v2294_v31  ;;  %v2296_v34 = vld [vmem:[%s3076_s23 + $0x30] sm:$0xff] }
 0x605   : > { %v1564_v36 = vpop.permute.xlu0 %1563 }
 0x606   : > { %1567 = vst.msk [vmem:[#allocation3] sm:$0xff] %vm1566_vm4, %v1564_v36  ;;  %v1646_v37 = vpop.permute.xlu1 %1645  ;;  %v2297_v36 = vld [vmem:[%s3076_s23 + $0x38] sm:$0xff] }
 0x607   : > { %1649 = vst.msk [vmem:[#allocation3] sm:$0xff] %vm1648_vm5, %v1646_v37  ;;  %v2875_v37 = vpack.c.bf16 %v2297_v36, %v2296_v34 }
 0x60b   : > { %v1728_v38 = vpop.permute.xlu1 %1727 }
 0x60c   : > { %1731 = vst.msk [vmem:[#allocation3] sm:$0xff] %vm1730_vm6, %v1728_v38  ;;  %v2584_v38 = vld [vmem:[%s3071_s20 + $0x20] ss:$0 sm:$0xff] }
 0x60f   : > { %v1885_v39 = vpop.permute.xlu0 %1884 }
 0x610   : > { %1887 = vst.msk [vmem:[#allocation3 + $0x8] sm:$0xff] %vm1566_vm4, %v1885_v39 }
 0x613   : > { %v1966_v40 = vpop.permute.xlu0 %1965  ;;  %v2047_v41 = vpop.permute.xlu1 %2046  ;;  %v2050_v43 = vld [vmem:[#allocation3] sm:$0xff] }
 0x614   : > { %1968 = vst.msk [vmem:[#allocation3 + $0x8] sm:$0xff] %vm1648_vm5, %v1966_v40  ;;  %2790 = vmatprep.mubr.msk.f32.mxu0 %vm434_vm1, %v2050_v43 }
 0x615   : > { %2049 = vst.msk [vmem:[#allocation3 + $0x8] sm:$0xff] %vm1730_vm6, %v2047_v41 }
 0x61c   : > { %v2051_v45 = vld [vmem:[#allocation3 + $0x8] sm:$0xff] }
 0x61d   : > { %2791 = vmatmul.mubr.msk.f32.vlgmr.msra.gmra.mrb[16].mxu0 %vm434_vm1, %v2051_v45 }
 0x61e   : > { %2866 = vmatpush3.bf16.msra.mxu0 %v2863_v27 }
 0x61f   : > { %2868 = vmatprep.subr.bf16.mxu0 %v2867_v30 }
 0x622   : > { %2870 = vmatpush3.bf16.msra.mxu0 %v2867_v30 }
 0x623   : > { %2872 = vmatprep.subr.bf16.mxu0 %v2871_v33 }
 0x626   : > { %2874 = vmatpush3.bf16.msra.mxu0 %v2871_v33 }
 0x627   : > { %2876 = vmatprep.subr.bf16.mxu0 %v2875_v37 }
 0x62a   : > { %2878 = vmatpush3.bf16.msra.mxu0 %v2875_v37 }
 0x6f0   : > { %v2792_v48 = vpop.f32.mrb[16].mxu0 }
 0x6f1   : > { %v2138_v49 = vadd.f32 %v2792_v48, %v2059_v47  ;;  %v2132_v50 = vpop.f32.mrb[17].mxu0 }
 0x6f2   : > { %v2133_v51 = vadd.f32 %v2132_v50, %v2059_v47 }
 0x6f3   : > { %v2142_v53 = vadd.f32 %v2138_v49, %v3116_v42 }
 0x6f4   : > { %v2141_v55 = vadd.f32 %v2133_v51, %v3106_v35 }
 0x6f5   : > { %v2146_v56 = vsel %vm434_vm1, %v2142_v53, 0.0 }
 0x6f6   : > { %2147 = vadd.xlane.f32.xlu1 %v2146_v56  ;;  %v2143_v57 = vsel %vm434_vm1, %v2141_v55, 0.0 }
 0x6f7   : > { %2144 = vadd.xlane.f32.xlu0 %v2143_v57 }
 0x783   : > { %v2148_v58 = vpop.xlane.xlu1 %2147 }
 0x784   : > { %v2151_v59 = vmul.f32 0.03125, %v2148_v58  ;;  %v2145_v60 = vpop.xlane.xlu0 %2144 }
 0x785   : > { %v2150_v61 = vmul.f32 0.03125, %v2145_v60 }
 0x786   : > { %v2153_v62 = vsub.f32 %v2142_v53, %v2151_v59 }
 0x787   : > { %v2152_v63 = vsub.f32 %v2141_v55, %v2150_v61 }
 0x788   : > { %v2155_v35 = vmul.f32 %v2153_v62, %v2153_v62 }
 0x789   : > { %v2154_v0 = vmul.f32 %v2152_v63, %v2152_v63 }
 0x78a   : > { %v2159_v1 = vsel %vm434_vm1, %v2155_v35, 0.0 }
 0x78b   : > { %v2156_v42 = vsel %vm434_vm1, %v2154_v0, 0.0 }
 0x78c   : > { %2157 = vadd.xlane.f32.xlu0 %v2156_v42  ;;  %v2300_v42 = vsub.s32 5, %v3136_v52 }
 0x78e   : > { %v2301_v35 = vrot.slane %v3140_v54, %v2300_v42 }
 0x790   : > { %2160 = vadd.xlane.f32.xlu0 %v2159_v1 }
 0x819   : > { %v2158_v7 = vpop.xlane.xlu0 %2157 }
 0x81a   : > { %v2162_v9 = vmul.f32 0.03125, %v2158_v7 }
 0x81c   : > { %v2164_v10 = vadd.f32 1e-12, %v2162_v9 }
 0x81d   : > { %v2161_v11 = vpop.xlane.xlu0 %2160 }
 0x81e   : > { %2941 = vrsqrt.f32 %v2164_v10  ;;  %v2163_v12 = vmul.f32 0.03125, %v2161_v11 }
 0x820   : > { %v2165_v13 = vadd.f32 1e-12, %v2163_v12 }
 0x822   : > { %2943 = vrsqrt.f32 %v2165_v13 }
 0x828   : > { %v2942_v17 = vpop.eup %2941 }
 0x829   : > { %v2168_v18 = vmul.f32 %v2942_v17, %v2152_v63 }
 0x82b   : > { %v2174_v44 = vmul.f32 %v2173_v16, %v2168_v18 }
 0x82c   : > { %v2944_v20 = vpop.eup %2943 }
 0x82d   : > { %v2169_v21 = vmul.f32 %v2944_v20, %v2153_v62  ;;  %v2180_v22 = vadd.f32 %v2179_v19, %v2174_v44 }
 0x82f   : > { %v2175_v23 = vmul.f32 %v2173_v16, %v2169_v21  ;;  %2801 = vmatprep.mubr.msk.f32.mxu1 %vm434_vm1, %v2180_v22 }
 0x831   : > { %v2181_v24 = vadd.f32 %v2179_v19, %v2175_v23 }
 0x833   : > { %2802 = vmatmul.mubr.msk.f32.vlgmr.msra.gmra.mrb[22].mxu1 %vm434_vm1, %v2181_v24 }
 0x906   : > { %v2803_v39 = vpop.f32.mrb[22].mxu1 }
 0x907   : > { %v2269_v40 = vadd.f32 %v2803_v39, %v2584_v38  ;;  %v2263_v41 = vpop.f32.mrb[23].mxu1 }
 0x908   : > { %v2264_v43 = vadd.f32 %v2584_v38, %v2263_v41 }
 0x909   : > { %v2275_v45 = vmul.f32 0.044715, %v2269_v40  ;;  %v2273_v62 = vmul.f32 0.5, %v2269_v40 }
 0x90a   : > { %v2274_v46 = vmul.f32 0.044715, %v2264_v43  ;;  %v2272_v60 = vmul.f32 0.5, %v2264_v43 }
 0x90b   : > { %v2277_v47 = vmul.f32 %v2275_v45, %v2269_v40 }
 0x90c   : > { %v2276_v48 = vmul.f32 %v2274_v46, %v2264_v43 }
 0x90d   : > { %v2279_v49 = vmul.f32 %v2277_v47, %v2269_v40 }
 0x90e   : > { %v2278_v50 = vmul.f32 %v2276_v48, %v2264_v43 }
 0x90f   : > { %v2281_v51 = vadd.f32 %v2279_v49, %v2269_v40 }
 0x910   : > { %v2280_v53 = vadd.f32 %v2278_v50, %v2264_v43 }
 0x911   : > { %v2283_v55 = vmul.f32 0.7978846, %v2281_v51 }
 0x912   : > { %v2282_v56 = vmul.f32 0.7978846, %v2280_v53 }
 0x913   : > { %2945 = vtanh.f32 %v2283_v55 }
 0x914   : > { %2947 = vtanh.f32 %v2282_v56 }
 0x91d   : > { %v2946_v57 = vpop.eup %2945 }
 0x91e   : > { %v2948_v58 = vpop.eup %2947  ;;  %v2287_v59 = vadd.f32 1.0, %v2946_v57 }
 0x91f   : > { %v2286_v61 = vadd.f32 1.0, %v2948_v58 }
 0x920   : > { %v2289_v0 = vmul.f32 %v2287_v59, %v2273_v62 }
 0x921   : > { %v2288_v63 = vmul.f32 %v2286_v61, %v2272_v60 }
 0x923   : > { %2820 = vmatprep.mubr.msk.f32.mxu0 %vm2302_vm7, %v2288_v63 }
 0x924   : > { %2821 = vmatmul.mubr.msk.f32.vlgmr.msra.gmra.mrb[18].mxu0 %vm2302_vm7, %v2289_v0 }
 0x9f7   : > { %v2822_v1 = vpop.f32.mrb[18].mxu0 }
 0x9f8   : > { %v2381_v2 = vadd.f32 %v2822_v1, %v2301_v35  ;;  %v2375_v3 = vpop.f32.mrb[19].mxu0 }
 0x9f9   : > { %v2376_v4 = vadd.f32 %v2375_v3, %v2301_v35 }
 0x9fa   : > { %v2385_v5 = vadd.f32 %v2381_v2, %v2181_v24  ;;  %v2414_v24 = vsub.s32 2, %v3136_v52 }
 0x9fb   : > { %v2384_v6 = vadd.f32 %v2376_v4, %v2180_v22 }
 0x9fc   : > { %v2389_v8 = vsel %vm434_vm1, %v2385_v5, 0.0  ;;  %v2415_v26 = vrot.slane %v3140_v54, %v2414_v24 }
 0x9fd   : > { %2390 = vadd.xlane.f32.xlu0 %v2389_v8  ;;  %v2386_v7 = vsel %vm434_vm1, %v2384_v6, 0.0 }
 0x9fe   : > { %2387 = vadd.xlane.f32.xlu1 %v2386_v7 }
 0xa8a   : > { %v2391_v9 = vpop.xlane.xlu0 %2390 }
 0xa8b   : > { %v2393_v10 = vmul.f32 0.03125, %v2391_v9  ;;  %v2388_v11 = vpop.xlane.xlu1 %2387 }
 0xa8c   : > { %v2392_v12 = vmul.f32 0.03125, %v2388_v11 }
 0xa8d   : > { %v2395_v13 = vsub.f32 %v2385_v5, %v2393_v10 }
 0xa8e   : > { %v2394_v14 = vsub.f32 %v2384_v6, %v2392_v12 }
 0xa8f   : > { %v2397_v15 = vmul.f32 %v2395_v13, %v2395_v13 }
 0xa90   : > { %v2396_v16 = vmul.f32 %v2394_v14, %v2394_v14 }
 0xa91   : > { %v2401_v17 = vsel %vm434_vm1, %v2397_v15, 0.0 }
 0xa92   : > { %2402 = vadd.xlane.f32.xlu0 %v2401_v17  ;;  %v2398_v18 = vsel %vm434_vm1, %v2396_v16, 0.0 }
 0xa93   : > { %2399 = vadd.xlane.f32.xlu1 %v2398_v18 }
 0xb1f   : > { %v2403_v19 = vpop.xlane.xlu0 %2402 }
 0xb20   : > { %v2405_v44 = vmul.f32 0.03125, %v2403_v19  ;;  %v2400_v20 = vpop.xlane.xlu1 %2399 }
 0xb21   : > { %v2404_v21 = vmul.f32 0.03125, %v2400_v20 }
 0xb22   : > { %v2407_v22 = vadd.f32 1e-12, %v2405_v44 }
 0xb23   : > { %v2406_v23 = vadd.f32 1e-12, %v2404_v21 }
 0xb24   : > { %2949 = vrsqrt.f32 %v2407_v22 }
 0xb25   : > { %2951 = vrsqrt.f32 %v2406_v23 }
 0xb2e   : > { %v2950_v27 = vpop.eup %2949 }
 0xb2f   : > { %v2952_v28 = vpop.eup %2951  ;;  %v2411_v30 = vmul.f32 %v2950_v27, %v2395_v13 }
 0xb30   : > { %v2410_v31 = vmul.f32 %v2952_v28, %v2394_v14  ;;  %2429 = sbr.rel (%p2589_p5) target bundleno = 2871 (0xb37), region = 60 }
 0xb31   : > { %v2417_v32 = vmul.f32 %v2415_v26, %v2411_v30 }
 0xb32   : > { %v2416_v33 = vmul.f32 %v2415_v26, %v2410_v31 }
 0xb33   : > { %v2423_v34 = vadd.f32 %v2421_v29, %v2417_v32 }
 0xb34   : > { %v2422_v36 = vadd.f32 %v2421_v29, %v2416_v33 }
 0xb35   : > { %2425 = vst.msk [vmem:[#allocation2 + $0x8] sm:$0xff] %vm434_vm1, %v2423_v34  ;;  %2431 = vst.msk [vmem:[#allocation4 + $0x8] sm:$0xff] (!%p2589_p5), %vm434_vm1, %v2423_v34 }
 0xb36   : > { %2424 = vst.msk [vmem:[#allocation2] sm:$0xff] %vm434_vm1, %v2422_v36  ;;  %2430 = vst.msk [vmem:[#allocation4] sm:$0xff] (!%p2589_p5), %vm434_vm1, %v2422_v36 }
 0xb37 PF: > { %p2885_p6 = scmp.eq.s32.totalorder %s3052_s28, 1  ;;  %s2999_s12 = smov [#allocation4]  }
 0xb38   : > { %s2438_s20 = sshll.u32 %s2999_s12, 4  ;;  %s2439_s20 = int_to_ptr.vmem [resolvable:$true] %s2438_s20 }
 0xb39   : > { %s2953_s23 = scalar_lea.vmem %s2439_s20, 256  ;;  %p2960_p10 = scmp.lt.s32.totalorder %s2439_s20, %s2439_s20 }
 0xb3a   : > { %p2954_p7 = scmp.ne.s32.totalorder %s2439_s20, %s2953_s23  ;;  %p2961_p11 = scmp.lt.s32.totalorder %s2953_s23, %s2953_s23 }
 0xb3c   : > { %p2955_p8 = pnand %p2954_p7, %p2885_p6  ;;  %p2962_p12 = por %p2961_p11, %p2960_p10 }
 0xb3e   : > { %p2956_p9 = pneg %p2955_p8 }
 0xb40   : > { %p2963_p13 = pnand %p2962_p12, %p2956_p9 }
 0xb42   : > { %2966 = shalt.err (!%p2963_p13)
}
 0xb43   : > { %s2967_s26 = scalar_lea.hbm %s3371_s8, 256 }
 0xb44   : > { %p2968_p0 = scmp.ne.s32.totalorder %s3371_s8, %s2967_s26  ;;  %p2973_p3 = scmp.lt.u32.totalorder %s2967_s26, %s3371_s8 }
 0xb46   : > { %p2969_p1 = pnand %p2968_p0, %p2885_p6 }
 0xb48   : > { %p2970_p2 = pneg %p2969_p1 }
 0xb4a   : > { %p2975_p4 = pnand %p2973_p3, %p2970_p2 }
 0xb4c   : > { %2978 = shalt.err (!%p2975_p4)
}
 0xb4d   : > { %s3000_s13 = smov 128  }
 0xb4e   : > { %2882 = dma.vmem_to_hbm [thread:$0]  (%p2885_p6), %s2439_s20, 256, %s3371_s8, [#allocation5], %s3000_s13, %s3000_s13, %s2996_s16  }
 0xb4f   : > { %2984 = dma.done.wait (%p2885_p6), [#allocation5], 256  }
 0xb50   : > { %2986 = vsyncadd (%p2885_p6), [#allocation5], 4294967040 }
 0xb51 PF: > { %s19_s27 = sadd.s32 1, %s2989_s27  }
 0xb52   : > { %p16_p5 = scmp.ge.s32.totalorder %s19_s27, 4  }
 0xb54   :  { %18 = sbr.rel (!%p16_p5) target bundleno = 1 (0x1), region = 101 }
 0xb5b   :  { %2454 = vsyncpa [#allocation5], 1 }
 0xb5c   :  { %2456 = vsyncpa [#allocation5 + $0x1], 1 }

</bundles_post_ra>
